<compile_context>
chip_gen: v7x
topology: tpu7x:2x2x1
jax: 0.10.0
libtpu: 0.0.40
codegen_flags: <defaults>
</compile_context>

<pallas_src>
import math
import jax
import jax.numpy as jnp
from jax.experimental import pallas as pl
from jax.experimental.pallas import tpu as pltpu
from jax.scipy.special import erf as _erf


MXU_DTYPE = jnp.bfloat16      # matmul operand dtype (MXU)
ACT_DTYPE = jnp.bfloat16      # inter-kernel activation dtype (halves HBM traffic)
LN_EPS = 1e-5
MASK_NEG = -1e9               # large finite additive-mask value (bf16/f32 safe)
VMEM_LIMIT = 64 * 1024 * 1024
_SQRT_HALF = 0.7071067811865476


# ------------------------------ helpers -------------------------------------

def _pick_tile(dim, target):
    """Largest 128-aligned tile <= target that evenly divides dim; else full dim."""
    if dim <= target:
        return dim
    t = target
    while t >= 128:
        if dim % t == 0:
            return t
        t -= 128
    return dim


def _cparams(*sem):
    return pltpu.CompilerParams(dimension_semantics=sem,
                                vmem_limit_bytes=VMEM_LIMIT)


def _erf_gelu(y):
    return 0.5 * y * (1.0 + _erf(y * _SQRT_HALF))


def _tanh_gelu(y):
    return 0.5 * y * (1.0 + jnp.tanh(0.7978845608028654 *
                                     (y + 0.044715 * y * y * y)))


def _ln(y, g, b):
    mu = jnp.mean(y, axis=-1, keepdims=True)
    yc = y - mu
    var = jnp.mean(yc * yc, axis=-1, keepdims=True)
    inv = jax.lax.rsqrt(var + LN_EPS)
    return yc * inv * g + b


# ------------------ runtime feature probes (run once, eagerly) ---------------

def _probe_erf_gelu():
    """True iff exact erf-GELU lowers + runs in a Pallas TPU kernel."""
    def _k(x_ref, o_ref):
        o_ref[...] = _erf_gelu(x_ref[...])
    try:
        out = pl.pallas_call(
            _k,
            out_shape=jax.ShapeDtypeStruct((8, 128), jnp.float32),
            in_specs=[pl.BlockSpec((8, 128), lambda: (0, 0))],
            out_specs=pl.BlockSpec((8, 128), lambda: (0, 0)),
        )(jnp.ones((8, 128), jnp.float32))
        jax.block_until_ready(out)
        return bool(jnp.all(jnp.isfinite(out)))
    except Exception:
        return False


def _probe_single_buffer():
    """True iff BlockSpec(pipeline_mode=pl.Buffered(1)) is supported."""
    def _k(x_ref, o_ref):
        o_ref[...] = x_ref[...]
    try:
        spec = pl.BlockSpec((8, 128), lambda i: (0, 0),
                            pipeline_mode=pl.Buffered(1))
        out = pl.pallas_call(
            _k,
            out_shape=jax.ShapeDtypeStruct((8, 128), jnp.float32),
            grid=(1,),
            in_specs=[spec],
            out_specs=pl.BlockSpec((8, 128), lambda i: (0, 0)),
        )(jnp.ones((8, 128), jnp.float32))
        jax.block_until_ready(out)
        return True
    except Exception:
        return False


_ERF_GELU_OK = _probe_erf_gelu()
_BUFFERED1_OK = _probe_single_buffer()


def _gelu(y):
    # Exact erf-GELU matches HF RoBERTa; tanh approximation only as fallback.
    return _erf_gelu(y) if _ERF_GELU_OK else _tanh_gelu(y)


def _const_spec(block_shape, index_map):
    """Spec for blocks whose index never changes: single-buffer to save VMEM."""
    if _BUFFERED1_OK:
        return pl.BlockSpec(block_shape, index_map, pipeline_mode=pl.Buffered(1))
    return pl.BlockSpec(block_shape, index_map)


# --------------------------- tiled dense matmul ------------------------------

def _matmul_kernel(x_ref, w_ref, b_ref, o_ref, acc_ref):
    @pl.when(pl.program_id(2) == 0)
    def _():
        acc_ref[...] = jnp.zeros_like(acc_ref)

    acc_ref[...] += jnp.dot(x_ref[...], w_ref[...],
                            preferred_element_type=jnp.float32)

    @pl.when(pl.program_id(2) == pl.num_programs(2) - 1)
    def _():
        o_ref[...] = (acc_ref[...] + b_ref[...]).astype(o_ref.dtype)


def dense(x, w, b):
    """x: [M, K] bf16, w: [K, N] bf16, b: [N] f32 -> [M, N] bf16."""
    M, K = x.shape
    _, N = w.shape
    tm = _pick_tile(M, 256)
    tn = _pick_tile(N, 256)
    tk = _pick_tile(K, 512)
    return pl.pallas_call(
        _matmul_kernel,
        out_shape=jax.ShapeDtypeStruct((M, N), ACT_DTYPE),
        grid=(M // tm, N // tn, K // tk),
        in_specs=[
            pl.BlockSpec((tm, tk), lambda i, j, k: (i, k)),
            pl.BlockSpec((tk, tn), lambda i, j, k: (k, j)),
            pl.BlockSpec((1, tn), lambda i, j, k: (0, j)),
        ],
        out_specs=pl.BlockSpec((tm, tn), lambda i, j, k: (i, j)),
        scratch_shapes=[pltpu.VMEM((tm, tn), jnp.float32)],
        compiler_params=_cparams("parallel", "parallel", "arbitrary"),
    )(x, w, b.reshape(1, N))


# ------------------------------- LayerNorm -----------------------------------

def _layernorm_kernel(x_ref, g_ref, b_ref, o_ref):
    y = x_ref[...].astype(jnp.float32)
    o_ref[...] = _ln(y, g_ref[...], b_ref[...]).astype(o_ref.dtype)


def layernorm(x, g, b):
    M, H = x.shape
    tm = _pick_tile(M, 512)
    return pl.pallas_call(
        _layernorm_kernel,
        out_shape=jax.ShapeDtypeStruct((M, H), ACT_DTYPE),
        grid=(M // tm,),
        in_specs=[
            pl.BlockSpec((tm, H), lambda i: (i, 0)),
            _const_spec((1, H), lambda i: (0, 0)),
            _const_spec((1, H), lambda i: (0, 0)),
        ],
        out_specs=pl.BlockSpec((tm, H), lambda i: (i, 0)),
        compiler_params=_cparams("parallel"),
    )(x, g.reshape(1, H), b.reshape(1, H))


# ----------------- attention: one batch / grid step, all heads ---------------

def _make_attention_kernel(nH, H, Dh, scale):
    def kernel(qkv_ref, m_ref, o_ref):
        m = m_ref[...]                              # [1, S] f32 additive mask
        # TODO(synk): at real RoBERTa sizes (Dh=64, S=512) process heads in
        # lane-aligned pairs and tile queries flash-style; here a per-head loop
        # with direct slice stores keeps only one head's temporaries live.
        for h in range(nH):
            q = qkv_ref[:, h * Dh:(h + 1) * Dh]                   # bf16
            k = qkv_ref[:, H + h * Dh:H + (h + 1) * Dh]           # bf16
            v = qkv_ref[:, 2 * H + h * Dh:2 * H + (h + 1) * Dh]   # bf16
            s = jax.lax.dot_general(q, k, (((1,), (1,)), ((), ())),
                                    preferred_element_type=jnp.float32)
            s = s * scale + m
            s = s - jnp.max(s, axis=-1, keepdims=True)
            p = jnp.exp(s)
            p = p * pl.reciprocal(jnp.sum(p, axis=-1, keepdims=True))
            o_ref[:, h * Dh:(h + 1) * Dh] = jnp.dot(
                p.astype(MXU_DTYPE), v,
                preferred_element_type=jnp.float32).astype(o_ref.dtype)
    return kernel


def attention(qkv2d, mask_add, B, S, H, nH):
    """qkv2d: [B*S, 3H] bf16 (fused QKV), mask_add: [B,1,S] f32 -> [B*S, H] bf16."""
    Dh = H // nH
    scale = 1.0 / math.sqrt(Dh)
    return pl.pallas_call(
        _make_attention_kernel(nH, H, Dh, scale),
        out_shape=jax.ShapeDtypeStruct((B * S, H), ACT_DTYPE),
        grid=(B,),
        in_specs=[
            pl.BlockSpec((S, 3 * H), lambda b: (b, 0)),
            pl.BlockSpec((None, 1, S), lambda b: (b, 0, 0)),
        ],
        out_specs=pl.BlockSpec((S, H), lambda b: (b, 0)),
        compiler_params=_cparams("parallel"),
    )(qkv2d, mask_add)


# -------------- fused attention-output projection + residual + LN ------------

def _attn_out_ln_kernel(ctx_ref, w_ref, b_ref, res_ref, g_ref, beta_ref, o_ref):
    y = jnp.dot(ctx_ref[...], w_ref[...],
                preferred_element_type=jnp.float32) + b_ref[...]
    y = y + res_ref[...].astype(jnp.float32)
    o_ref[...] = _ln(y, g_ref[...], beta_ref[...]).astype(o_ref.dtype)


def attn_out_layernorm(ctx, wo, bo, res, g, b):
    M, H = ctx.shape
    tm = _pick_tile(M, 512)
    return pl.pallas_call(
        _attn_out_ln_kernel,
        out_shape=jax.ShapeDtypeStruct((M, H), ACT_DTYPE),
        grid=(M // tm,),
        in_specs=[
            pl.BlockSpec((tm, H), lambda i: (i, 0)),
            _const_spec((H, H), lambda i: (0, 0)),
            _const_spec((1, H), lambda i: (0, 0)),
            pl.BlockSpec((tm, H), lambda i: (i, 0)),
            _const_spec((1, H), lambda i: (0, 0)),
            _const_spec((1, H), lambda i: (0, 0)),
        ],
        out_specs=pl.BlockSpec((tm, H), lambda i: (i, 0)),
        compiler_params=_cparams("parallel"),
    )(ctx, wo, bo.reshape(1, H), res, g.reshape(1, H), b.reshape(1, H))


# -- fused FFN: up-proj + GELU + down-proj + residual + LN, I-dim chunked -----

def _ffn_ln_kernel(x_ref, wi_ref, bi_ref, wf_ref, bf_ref, g_ref, beta_ref,
                   o_ref, acc_ref):
    j = pl.program_id(1)

    @pl.when(j == 0)
    def _():
        acc_ref[...] = jnp.zeros_like(acc_ref)

    # [tm, ti] chunk of the intermediate never materializes at full width.
    h1 = jnp.dot(x_ref[...], wi_ref[...],
                 preferred_element_type=jnp.float32) + bi_ref[...]
    h1 = _gelu(h1)
    acc_ref[...] += jnp.dot(h1.astype(MXU_DTYPE), wf_ref[...],
                            preferred_element_type=jnp.float32)

    @pl.when(j == pl.num_programs(1) - 1)
    def _():
        y = acc_ref[...] + bf_ref[...] + x_ref[...].astype(jnp.float32)
        o_ref[...] = _ln(y, g_ref[...], beta_ref[...]).astype(o_ref.dtype)


def ffn_layernorm(x, wi, bi, wf, bfv, g, b):
    M, H = x.shape
    I = wi.shape[1]
    tm = _pick_tile(M, 256)
    ti = _pick_tile(I, 512)
    return pl.pallas_call(
        _ffn_ln_kernel,
        out_shape=jax.ShapeDtypeStruct((M, H), ACT_DTYPE),
        grid=(M // tm, I // ti),
        in_specs=[
            pl.BlockSpec((tm, H), lambda i, j: (i, 0)),
            pl.BlockSpec((H, ti), lambda i, j: (0, j)),
            pl.BlockSpec((1, ti), lambda i, j: (0, j)),
            pl.BlockSpec((ti, H), lambda i, j: (j, 0)),
            _const_spec((1, H), lambda i, j: (0, 0)),
            _const_spec((1, H), lambda i, j: (0, 0)),
            _const_spec((1, H), lambda i, j: (0, 0)),
        ],
        out_specs=pl.BlockSpec((tm, H), lambda i, j: (i, 0)),
        scratch_shapes=[pltpu.VMEM((tm, H), jnp.float32)],
        compiler_params=_cparams("parallel", "arbitrary"),
    )(x, wi, bi.reshape(1, I), wf, bfv.reshape(1, H),
      g.reshape(1, H), b.reshape(1, H))


# ------------------- fused pooler (tanh) + 2-way classifier ------------------

def _pool_cls_kernel(x_ref, wp_ref, bp_ref, wc_ref, bc_ref, o_ref):
    pooled = jnp.tanh(jnp.dot(x_ref[...], wp_ref[...],
                              preferred_element_type=jnp.float32) + bp_ref[...])
    o_ref[...] = (jnp.dot(pooled.astype(MXU_DTYPE), wc_ref[...],
                          preferred_element_type=jnp.float32)
                  + bc_ref[...]).astype(o_ref.dtype)


def pool_classify(cls_tok, wp, bp, wc, bc):
    B, H = cls_tok.shape
    C = wc.shape[1]
    return pl.pallas_call(
        _pool_cls_kernel,
        out_shape=jax.ShapeDtypeStruct((B, C), jnp.float32),
        in_specs=[
            pl.BlockSpec((B, H), lambda: (0, 0)),
            pl.BlockSpec((H, H), lambda: (0, 0)),
            pl.BlockSpec((1, H), lambda: (0, 0)),
            pl.BlockSpec((H, C), lambda: (0, 0)),
            pl.BlockSpec((1, C), lambda: (0, 0)),
        ],
        out_specs=pl.BlockSpec((B, C), lambda: (0, 0)),
    )(cls_tok, wp, bp.reshape(1, H), wc, bc.reshape(1, C))


# ------------------------------ model (glue) ---------------------------------

CFG = dict(vocab_size=100, hidden=32, n_layers=2, n_heads=4,
           intermediate=64, max_pos=32, pad_id=1, type_vocab=1)


def init_params(key, cfg):
    H, I = cfg["hidden"], cfg["intermediate"]
    std = 0.02
    keys = iter(jax.random.split(key, 64))
    nf = lambda s: (std * jax.random.normal(next(keys), s)).astype(jnp.float32)
    nw = lambda s: (std * jax.random.normal(next(keys), s)).astype(MXU_DTYPE)
    p = {
        "word_emb": nf((cfg["vocab_size"], H)),
        "pos_emb": nf((cfg["max_pos"], H)),
        "type_emb": nf((cfg["type_vocab"], H)),
        "emb_ln_g": jnp.ones((H,), jnp.float32),
        "emb_ln_b": jnp.zeros((H,), jnp.float32),
        "layers": [],
        "pool_w": nw((H, H)), "pool_b": jnp.zeros((H,), jnp.float32),
        "cls_w": nw((H, 2)), "cls_b": jnp.zeros((2,), jnp.float32),
    }
    for _ in range(cfg["n_layers"]):
        p["layers"].append({
            # fused QKV projection: [H, 3H] (q | k | v along the output axis)
            "w_qkv": nw((H, 3 * H)), "b_qkv": jnp.zeros((3 * H,), jnp.float32),
            "wo": nw((H, H)), "bo": jnp.zeros((H,), jnp.float32),
            "ln1_g": jnp.ones((H,), jnp.float32), "ln1_b": jnp.zeros((H,), jnp.float32),
            "wi": nw((H, I)), "bi": jnp.zeros((I,), jnp.float32),
            "wf": nw((I, H)), "bf": jnp.zeros((H,), jnp.float32),
            "ln2_g": jnp.ones((H,), jnp.float32), "ln2_b": jnp.zeros((H,), jnp.float32),
        })
    return p


def roberta_forward(params, enc_inputs, attention_mask, cfg=CFG):
    B, S = enc_inputs.shape
    H, nH = cfg["hidden"], cfg["n_heads"]
    pad = cfg["pad_id"]

    # --- embeddings (gathers are plain-JAX glue) ---
    valid = (enc_inputs != pad).astype(jnp.int32)
    position_ids = jnp.cumsum(valid, axis=1) * valid + pad   # RoBERTa position ids
    # TODO(synk): HF errors for seq > max_pos; clamp is only an OOB guard here.
    position_ids = jnp.minimum(position_ids, cfg["max_pos"] - 1)
    emb = (jnp.take(params["word_emb"], enc_inputs, axis=0)
           + jnp.take(params["pos_emb"], position_ids, axis=0)
           + params["type_emb"][0][None, None, :])
    h2d = layernorm(emb.reshape(B * S, H), params["emb_ln_g"], params["emb_ln_b"])
    # NOTE: dropout layers are identity (eval mode).

    mask_add = ((1.0 - attention_mask.astype(jnp.float32)) * MASK_NEG
                ).reshape(B, 1, S)

    for lyr in params["layers"]:
        qkv = dense(h2d, lyr["w_qkv"], lyr["b_qkv"])               # [B*S, 3H] bf16
        ctx = attention(qkv, mask_add, B, S, H, nH)                # [B*S, H]  bf16
        h2d = attn_out_layernorm(ctx, lyr["wo"], lyr["bo"], h2d,
                                 lyr["ln1_g"], lyr["ln1_b"])       # LN(ctx@Wo+bo + h)
        h2d = ffn_layernorm(h2d, lyr["wi"], lyr["bi"], lyr["wf"], lyr["bf"],
                            lyr["ln2_g"], lyr["ln2_b"])            # LN(FFN(h) + h)

    cls_tok = h2d.reshape(B, S, H)[:, 0, :]                        # [B, H] bf16
    logits = pool_classify(cls_tok, params["pool_w"], params["pool_b"],
                           params["cls_w"], params["cls_b"])        # [B, 2] f32
    return logits


# --------------------------------- main ---------------------------------------

if __name__ == "__main__":
    key = jax.random.PRNGKey(0)
    k_param, k_ids = jax.random.split(key)

    B, S = 2, 8
    params = init_params(k_param, CFG)

    enc_inputs = jax.random.randint(k_ids, (B, S), minval=3,
                                    maxval=CFG["vocab_size"], dtype=jnp.int32)
    attention_mask = jnp.array([[1, 1, 1, 1, 1, 1, 1, 1],
                                [1, 1, 1, 1, 1, 1, 0, 0]], dtype=jnp.int32)

    fwd = jax.jit(roberta_forward)
    logits = fwd(params, enc_inputs, attention_mask)
    logits = jax.block_until_ready(logits)
    assert logits.shape == (B, 2) and logits.dtype == jnp.float32
    assert bool(jnp.all(jnp.isfinite(logits)))
    print("KERNEL_OK")
</pallas_src>

<mosaic_0001>
module attributes {stable_mosaic.version = 11 : i64} {
  func.func @_k(%arg0: memref<8x128xf32, #tpu.memory_space<vmem>>, %arg1: memref<8x128xf32, #tpu.memory_space<vmem>>) attributes {dimension_semantics = [], scalar_prefetch = 0 : i64, scratch_operands = 0 : i64, tpu.core_type = #tpu.core_type<tc>} {
    %c0 = arith.constant 0 : index
    %c0_0 = arith.constant 0 : index
    %0 = vector.load %arg0[%c0, %c0_0] : memref<8x128xf32, #tpu.memory_space<vmem>>, vector<8x128xf32>
    %cst = arith.constant 5.000000e-01 : f32
    %1 = vector.broadcast %cst : f32 to vector<8x128xf32>
    %2 = arith.mulf %1, %0 : vector<8x128xf32>
    %cst_1 = arith.constant 0.707106769 : f32
    %3 = vector.broadcast %cst_1 : f32 to vector<8x128xf32>
    %4 = arith.mulf %0, %3 : vector<8x128xf32>
    %5 = math.erf %4 : vector<8x128xf32>
    %cst_2 = arith.constant 1.000000e+00 : f32
    %6 = vector.broadcast %cst_2 : f32 to vector<8x128xf32>
    %7 = arith.addf %6, %5 : vector<8x128xf32>
    %8 = arith.mulf %2, %7 : vector<8x128xf32>
    %c0_3 = arith.constant 0 : index
    %c0_4 = arith.constant 0 : index
    %9 = vector.load %arg1[%c0_3, %c0_4] : memref<8x128xf32, #tpu.memory_space<vmem>>, vector<8x128xf32>
    tpu.vector_store %arg1[%c0_3, %c0_4], %8 {strides = array<i32>} : memref<8x128xf32, #tpu.memory_space<vmem>>, vector<8x128xf32>,
    return
  }
}

module attributes {stable_mosaic.version = 11 : i64} {
  func.func @_k(%arg0: i32, %arg1: memref<8x128xf32, #tpu.memory_space<vmem>>, %arg2: memref<8x128xf32, #tpu.memory_space<vmem>>) attributes {dimension_semantics = [#tpu.dimension_semantics<arbitrary>], iteration_bounds = array<i64: 1>, scalar_prefetch = 0 : i64, scratch_operands = 0 : i64, tpu.core_type = #tpu.core_type<tc>, window_params = [{pipeline_mode = #tpu.pipeline_mode<synchronous>, transform_indices = @transform_0, window_bounds = array<i64: 8, 128>}, {pipeline_mode = #tpu.pipeline_mode<synchronous>, transform_indices = @transform_1, window_bounds = array<i64: 8, 128>}]} {
    %c0 = arith.constant 0 : index
    %c0_0 = arith.constant 0 : index
    %0 = vector.load %arg1[%c0, %c0_0] : memref<8x128xf32, #tpu.memory_space<vmem>>, vector<8x128xf32>
    %c0_1 = arith.constant 0 : index
    %c0_2 = arith.constant 0 : index
    %1 = vector.load %arg2[%c0_1, %c0_2] : memref<8x128xf32, #tpu.memory_space<vmem>>, vector<8x128xf32>
    tpu.vector_store %arg2[%c0_1, %c0_2], %0 {strides = array<i32>} : memref<8x128xf32, #tpu.memory_space<vmem>>, vector<8x128xf32>,
    return
  }
  func.func @transform_0(%arg0: i32) -> (i32, i32) {
    %c0_i32 = arith.constant 0 : i32
    %c0_i32_0 = arith.constant 0 : i32
    %c0_i32_1 = arith.constant 0 : i32
    return %c0_i32, %c0_i32_0 : i32, i32
  }
  func.func @transform_1(%arg0: i32) -> (i32, i32) {
    %c0_i32 = arith.constant 0 : i32
    %c0_i32_0 = arith.constant 0 : i32
    %c0_i32_1 = arith.constant 0 : i32
    return %c0_i32, %c0_i32_0 : i32, i32
  }
}

module attributes {stable_mosaic.version = 11 : i64} {
  func.func @_layernorm_kernel(%arg0: i32, %arg1: memref<16x32xf32, #tpu.memory_space<vmem>>, %arg2: memref<1x32xf32, #tpu.memory_space<vmem>>, %arg3: memref<1x32xf32, #tpu.memory_space<vmem>>, %arg4: memref<16x32xbf16, #tpu.memory_space<vmem>>) attributes {dimension_semantics = [#tpu.dimension_semantics<parallel>], iteration_bounds = array<i64: 1>, scalar_prefetch = 0 : i64, scratch_operands = 0 : i64, tpu.core_type = #tpu.core_type<tc>, window_params = [{transform_indices = @transform_0, window_bounds = array<i64: 16, 32>}, {pipeline_mode = #tpu.pipeline_mode<synchronous>, transform_indices = @transform_1, window_bounds = array<i64: 1, 32>}, {pipeline_mode = #tpu.pipeline_mode<synchronous>, transform_indices = @transform_2, window_bounds = array<i64: 1, 32>}, {transform_indices = @transform_3, window_bounds = array<i64: 16, 32>}]} {
    %c0 = arith.constant 0 : index
    %c0_0 = arith.constant 0 : index
    %0 = vector.load %arg1[%c0, %c0_0] : memref<16x32xf32, #tpu.memory_space<vmem>>, vector<16x32xf32>
    %c0_1 = arith.constant 0 : index
    %c0_2 = arith.constant 0 : index
    %1 = vector.load %arg2[%c0_1, %c0_2] : memref<1x32xf32, #tpu.memory_space<vmem>>, vector<1x32xf32>
    %c0_3 = arith.constant 0 : index
    %c0_4 = arith.constant 0 : index
    %2 = vector.load %arg3[%c0_3, %c0_4] : memref<1x32xf32, #tpu.memory_space<vmem>>, vector<1x32xf32>
    %cst = arith.constant dense<0.000000e+00> : vector<16xf32>
    %3 = vector.multi_reduction <add>, %0, %cst [1] : vector<16x32xf32> to vector<16xf32>
    %4 = vector.shape_cast %3 : vector<16xf32> to vector<16x1xf32>
    %cst_5 = arith.constant 3.200000e+01 : f32
    %5 = vector.broadcast %cst_5 : f32 to vector<16x1xf32>
    %6 = arith.divf %4, %5 : vector<16x1xf32>
    %7 = vector.broadcast %6 : vector<16x1xf32> to vector<16x32xf32>
    %8 = arith.subf %0, %7 : vector<16x32xf32>
    %9 = arith.mulf %8, %8 : vector<16x32xf32>
    %cst_6 = arith.constant dense<0.000000e+00> : vector<16xf32>
    %10 = vector.multi_reduction <add>, %9, %cst_6 [1] : vector<16x32xf32> to vector<16xf32>
    %11 = vector.shape_cast %10 : vector<16xf32> to vector<16x1xf32>
    %cst_7 = arith.constant 3.200000e+01 : f32
    %12 = vector.broadcast %cst_7 : f32 to vector<16x1xf32>
    %13 = arith.divf %11, %12 : vector<16x1xf32>
    %cst_8 = arith.constant 9.99999974E-6 : f32
    %14 = vector.broadcast %cst_8 : f32 to vector<16x1xf32>
    %15 = arith.addf %13, %14 : vector<16x1xf32>
    %16 = math.rsqrt %15 : vector<16x1xf32>
    %17 = vector.broadcast %16 : vector<16x1xf32> to vector<16x32xf32>
    %18 = arith.mulf %8, %17 : vector<16x32xf32>
    %19 = vector.broadcast %1 : vector<1x32xf32> to vector<16x32xf32>
    %20 = arith.mulf %18, %19 : vector<16x32xf32>
    %21 = vector.broadcast %2 : vector<1x32xf32> to vector<16x32xf32>
    %22 = arith.addf %20, %21 : vector<16x32xf32>
    %23 = arith.truncf %22 : vector<16x32xf32> to vector<16x32xbf16>
    %c0_9 = arith.constant 0 : index
    %c0_10 = arith.constant 0 : index
    %24 = vector.load %arg4[%c0_9, %c0_10] : memref<16x32xbf16, #tpu.memory_space<vmem>>, vector<16x32xbf16>
    tpu.vector_store %arg4[%c0_9, %c0_10], %23 {strides = array<i32>} : memref<16x32xbf16, #tpu.memory_space<vmem>>, vector<16x32xbf16>,
    return
  }
  func.func @transform_0(%arg0: i32) -> (i32, i32) {
    %c0_i32 = arith.constant 0 : i32
    %c0_i32_0 = arith.constant 0 : i32
    return %arg0, %c0_i32 : i32, i32
  }
  func.func @transform_1(%arg0: i32) -> (i32, i32) {
    %c0_i32 = arith.constant 0 : i32
    %c0_i32_0 = arith.constant 0 : i32
    %c0_i32_1 = arith.constant 0 : i32
    return %c0_i32, %c0_i32_0 : i32, i32
  }
  func.func @transform_2(%arg0: i32) -> (i32, i32) {
    %c0_i32 = arith.constant 0 : i32
    %c0_i32_0 = arith.constant 0 : i32
    %c0_i32_1 = arith.constant 0 : i32
    return %c0_i32, %c0_i32_0 : i32, i32
  }
  func.func @transform_3(%arg0: i32) -> (i32, i32) {
    %c0_i32 = arith.constant 0 : i32
    %c0_i32_0 = arith.constant 0 : i32
    return %arg0, %c0_i32 : i32, i32
  }
}

module attributes {stable_mosaic.version = 11 : i64} {
  func.func @kernel(%arg0: i32, %arg1: memref<8x96xbf16, #tpu.memory_space<vmem>>, %arg2: memref<1x1x8xf32, #tpu.memory_space<vmem>>, %arg3: memref<8x32xbf16, #tpu.memory_space<vmem>>) attributes {dimension_semantics = [#tpu.dimension_semantics<parallel>], iteration_bounds = array<i64: 2>, scalar_prefetch = 0 : i64, scratch_operands = 0 : i64, tpu.core_type = #tpu.core_type<tc>, window_params = [{transform_indices = @transform_0, window_bounds = array<i64: 8, 96>}, {transform_indices = @transform_1, window_bounds = array<i64: 1, 1, 8>}, {transform_indices = @transform_2, window_bounds = array<i64: 8, 32>}]} {
    %c0 = arith.constant 0 : index
    %c0_0 = arith.constant 0 : index
    %c0_1 = arith.constant 0 : index
    %0 = vector.load %arg2[%c0, %c0_0, %c0_1] : memref<1x1x8xf32, #tpu.memory_space<vmem>>, vector<1x1x8xf32>
    %1 = vector.shape_cast %0 : vector<1x1x8xf32> to vector<1x8xf32>
    %c0_2 = arith.constant 0 : index
    %c0_3 = arith.constant 0 : index
    %2 = vector.load %arg1[%c0_2, %c0_3] : memref<8x96xbf16, #tpu.memory_space<vmem>>, vector<8x8xbf16>
    %c0_4 = arith.constant 0 : index
    %c32 = arith.constant 32 : index
    %3 = vector.load %arg1[%c0_4, %c32] : memref<8x96xbf16, #tpu.memory_space<vmem>>, vector<8x8xbf16>
    %c0_5 = arith.constant 0 : index
    %c64 = arith.constant 64 : index
    %4 = vector.load %arg1[%c0_5, %c64] : memref<8x96xbf16, #tpu.memory_space<vmem>>, vector<8x8xbf16>
    %cst = arith.constant dense<0.000000e+00> : vector<8x8xf32>
    %5 = tpu.matmul %2, %3, %cst {dimension_numbers = #tpu.dot_dimension_numbers<[1], [1], [0], [0], [0, 0, 1, 0], [], []>} : vector<8x8xbf16>, vector<8x8xbf16>, vector<8x8xf32> -> vector<8x8xf32>
    %cst_6 = arith.constant 0.353553385 : f32
    %6 = vector.broadcast %cst_6 : f32 to vector<8x8xf32>
    %7 = arith.mulf %5, %6 : vector<8x8xf32>
    %8 = vector.broadcast %1 : vector<1x8xf32> to vector<8x8xf32>
    %9 = arith.addf %7, %8 : vector<8x8xf32>
    %cst_7 = arith.constant dense<0xFF800000> : vector<8xf32>
    %10 = vector.multi_reduction <maximumf>, %9, %cst_7 [1] : vector<8x8xf32> to vector<8xf32>
    %11 = vector.shape_cast %10 : vector<8xf32> to vector<8x1xf32>
    %12 = vector.broadcast %11 : vector<8x1xf32> to vector<8x8xf32>
    %13 = arith.subf %9, %12 : vector<8x8xf32>
    %14 = math.exp %13 : vector<8x8xf32>
    %cst_8 = arith.constant dense<0.000000e+00> : vector<8xf32>
    %15 = vector.multi_reduction <add>, %14, %cst_8 [1] : vector<8x8xf32> to vector<8xf32>
    %16 = vector.shape_cast %15 : vector<8xf32> to vector<8x1xf32>
    %17 = tpu.reciprocal %16 : vector<8x1xf32> -> vector<8x1xf32>
    %18 = vector.broadcast %17 : vector<8x1xf32> to vector<8x8xf32>
    %19 = arith.mulf %14, %18 : vector<8x8xf32>
    %20 = arith.truncf %19 : vector<8x8xf32> to vector<8x8xbf16>
    %cst_9 = arith.constant dense<0.000000e+00> : vector<8x8xf32>
    %21 = tpu.matmul %20, %4, %cst_9 {dimension_numbers = #tpu.dot_dimension_numbers<[1], [0], [0], [1], [0, 0, 1, 1], [], []>} : vector<8x8xbf16>, vector<8x8xbf16>, vector<8x8xf32> -> vector<8x8xf32>
    %22 = arith.truncf %21 : vector<8x8xf32> to vector<8x8xbf16>
    %c0_10 = arith.constant 0 : index
    %c0_11 = arith.constant 0 : index
    %23 = vector.load %arg3[%c0_10, %c0_11] : memref<8x32xbf16, #tpu.memory_space<vmem>>, vector<8x8xbf16>
    tpu.vector_store %arg3[%c0_10, %c0_11], %22 {strides = array<i32>} : memref<8x32xbf16, #tpu.memory_space<vmem>>, vector<8x8xbf16>,
    %c0_12 = arith.constant 0 : index
    %c8 = arith.constant 8 : index
    %24 = vector.load %arg1[%c0_12, %c8] : memref<8x96xbf16, #tpu.memory_space<vmem>>, vector<8x8xbf16>
    %c0_13 = arith.constant 0 : index
    %c40 = arith.constant 40 : index
    %25 = vector.load %arg1[%c0_13, %c40] : memref<8x96xbf16, #tpu.memory_space<vmem>>, vector<8x8xbf16>
    %c0_14 = arith.constant 0 : index
    %c72 = arith.constant 72 : index
    %26 = vector.load %arg1[%c0_14, %c72] : memref<8x96xbf16, #tpu.memory_space<vmem>>, vector<8x8xbf16>
    %cst_15 = arith.constant dense<0.000000e+00> : vector<8x8xf32>
    %27 = tpu.matmul %24, %25, %cst_15 {dimension_numbers = #tpu.dot_dimension_numbers<[1], [1], [0], [0], [0, 0, 1, 0], [], []>} : vector<8x8xbf16>, vector<8x8xbf16>, vector<8x8xf32> -> vector<8x8xf32>
    %cst_16 = arith.constant 0.353553385 : f32
    %28 = vector.broadcast %cst_16 : f32 to vector<8x8xf32>
    %29 = arith.mulf %27, %28 : vector<8x8xf32>
    %30 = vector.broadcast %1 : vector<1x8xf32> to vector<8x8xf32>
    %31 = arith.addf %29, %30 : vector<8x8xf32>
    %cst_17 = arith.constant dense<0xFF800000> : vector<8xf32>
    %32 = vector.multi_reduction <maximumf>, %31, %cst_17 [1] : vector<8x8xf32> to vector<8xf32>
    %33 = vector.shape_cast %32 : vector<8xf32> to vector<8x1xf32>
    %34 = vector.broadcast %33 : vector<8x1xf32> to vector<8x8xf32>
    %35 = arith.subf %31, %34 : vector<8x8xf32>
    %36 = math.exp %35 : vector<8x8xf32>
    %cst_18 = arith.constant dense<0.000000e+00> : vector<8xf32>
    %37 = vector.multi_reduction <add>, %36, %cst_18 [1] : vector<8x8xf32> to vector<8xf32>
    %38 = vector.shape_cast %37 : vector<8xf32> to vector<8x1xf32>
    %39 = tpu.reciprocal %38 : vector<8x1xf32> -> vector<8x1xf32>
    %40 = vector.broadcast %39 : vector<8x1xf32> to vector<8x8xf32>
    %41 = arith.mulf %36, %40 : vector<8x8xf32>
    %42 = arith.truncf %41 : vector<8x8xf32> to vector<8x8xbf16>
    %cst_19 = arith.constant dense<0.000000e+00> : vector<8x8xf32>
    %43 = tpu.matmul %42, %26, %cst_19 {dimension_numbers = #tpu.dot_dimension_numbers<[1], [0], [0], [1], [0, 0, 1, 1], [], []>} : vector<8x8xbf16>, vector<8x8xbf16>, vector<8x8xf32> -> vector<8x8xf32>
    %44 = arith.truncf %43 : vector<8x8xf32> to vector<8x8xbf16>
    %c0_20 = arith.constant 0 : index
    %c8_21 = arith.constant 8 : index
    %45 = vector.load %arg3[%c0_20, %c8_21] : memref<8x32xbf16, #tpu.memory_space<vmem>>, vector<8x8xbf16>
    tpu.vector_store %arg3[%c0_20, %c8_21], %44 {strides = array<i32>} : memref<8x32xbf16, #tpu.memory_space<vmem>>, vector<8x8xbf16>,
    %c0_22 = arith.constant 0 : index
    %c16 = arith.constant 16 : index
    %46 = vector.load %arg1[%c0_22, %c16] : memref<8x96xbf16, #tpu.memory_space<vmem>>, vector<8x8xbf16>
    %c0_23 = arith.constant 0 : index
    %c48 = arith.constant 48 : index
    %47 = vector.load %arg1[%c0_23, %c48] : memref<8x96xbf16, #tpu.memory_space<vmem>>, vector<8x8xbf16>
    %c0_24 = arith.constant 0 : index
    %c80 = arith.constant 80 : index
    %48 = vector.load %arg1[%c0_24, %c80] : memref<8x96xbf16, #tpu.memory_space<vmem>>, vector<8x8xbf16>
    %cst_25 = arith.constant dense<0.000000e+00> : vector<8x8xf32>
    %49 = tpu.matmul %46, %47, %cst_25 {dimension_numbers = #tpu.dot_dimension_numbers<[1], [1], [0], [0], [0, 0, 1, 0], [], []>} : vector<8x8xbf16>, vector<8x8xbf16>, vector<8x8xf32> -> vector<8x8xf32>
    %cst_26 = arith.constant 0.353553385 : f32
    %50 = vector.broadcast %cst_26 : f32 to vector<8x8xf32>
    %51 = arith.mulf %49, %50 : vector<8x8xf32>
    %52 = vector.broadcast %1 : vector<1x8xf32> to vector<8x8xf32>
    %53 = arith.addf %51, %52 : vector<8x8xf32>
    %cst_27 = arith.constant dense<0xFF800000> : vector<8xf32>
    %54 = vector.multi_reduction <maximumf>, %53, %cst_27 [1] : vector<8x8xf32> to vector<8xf32>
    %55 = vector.shape_cast %54 : vector<8xf32> to vector<8x1xf32>
    %56 = vector.broadcast %55 : vector<8x1xf32> to vector<8x8xf32>
    %57 = arith.subf %53, %56 : vector<8x8xf32>
    %58 = math.exp %57 : vector<8x8xf32>
    %cst_28 = arith.constant dense<0.000000e+00> : vector<8xf32>
    %59 = vector.multi_reduction <add>, %58, %cst_28 [1] : vector<8x8xf32> to vector<8xf32>
    %60 = vector.shape_cast %59 : vector<8xf32> to vector<8x1xf32>
    %61 = tpu.reciprocal %60 : vector<8x1xf32> -> vector<8x1xf32>
    %62 = vector.broadcast %61 : vector<8x1xf32> to vector<8x8xf32>
    %63 = arith.mulf %58, %62 : vector<8x8xf32>
    %64 = arith.truncf %63 : vector<8x8xf32> to vector<8x8xbf16>
    %cst_29 = arith.constant dense<0.000000e+00> : vector<8x8xf32>
    %65 = tpu.matmul %64, %48, %cst_29 {dimension_numbers = #tpu.dot_dimension_numbers<[1], [0], [0], [1], [0, 0, 1, 1], [], []>} : vector<8x8xbf16>, vector<8x8xbf16>, vector<8x8xf32> -> vector<8x8xf32>
    %66 = arith.truncf %65 : vector<8x8xf32> to vector<8x8xbf16>
    %c0_30 = arith.constant 0 : index
    %c16_31 = arith.constant 16 : index
    %67 = vector.load %arg3[%c0_30, %c16_31] : memref<8x32xbf16, #tpu.memory_space<vmem>>, vector<8x8xbf16>
    tpu.vector_store %arg3[%c0_30, %c16_31], %66 {strides = array<i32>} : memref<8x32xbf16, #tpu.memory_space<vmem>>, vector<8x8xbf16>,
    %c0_32 = arith.constant 0 : index
    %c24 = arith.constant 24 : index
    %68 = vector.load %arg1[%c0_32, %c24] : memref<8x96xbf16, #tpu.memory_space<vmem>>, vector<8x8xbf16>
    %c0_33 = arith.constant 0 : index
    %c56 = arith.constant 56 : index
    %69 = vector.load %arg1[%c0_33, %c56] : memref<8x96xbf16, #tpu.memory_space<vmem>>, vector<8x8xbf16>
    %c0_34 = arith.constant 0 : index
    %c88 = arith.constant 88 : index
    %70 = vector.load %arg1[%c0_34, %c88] : memref<8x96xbf16, #tpu.memory_space<vmem>>, vector<8x8xbf16>
    %cst_35 = arith.constant dense<0.000000e+00> : vector<8x8xf32>
    %71 = tpu.matmul %68, %69, %cst_35 {dimension_numbers = #tpu.dot_dimension_numbers<[1], [1], [0], [0], [0, 0, 1, 0], [], []>} : vector<8x8xbf16>, vector<8x8xbf16>, vector<8x8xf32> -> vector<8x8xf32>
    %cst_36 = arith.constant 0.353553385 : f32
    %72 = vector.broadcast %cst_36 : f32 to vector<8x8xf32>
    %73 = arith.mulf %71, %72 : vector<8x8xf32>
    %74 = vector.broadcast %1 : vector<1x8xf32> to vector<8x8xf32>
    %75 = arith.addf %73, %74 : vector<8x8xf32>
    %cst_37 = arith.constant dense<0xFF800000> : vector<8xf32>
    %76 = vector.multi_reduction <maximumf>, %75, %cst_37 [1] : vector<8x8xf32> to vector<8xf32>
    %77 = vector.shape_cast %76 : vector<8xf32> to vector<8x1xf32>
    %78 = vector.broadcast %77 : vector<8x1xf32> to vector<8x8xf32>
    %79 = arith.subf %75, %78 : vector<8x8xf32>
    %80 = math.exp %79 : vector<8x8xf32>
    %cst_38 = arith.constant dense<0.000000e+00> : vector<8xf32>
    %81 = vector.multi_reduction <add>, %80, %cst_38 [1] : vector<8x8xf32> to vector<8xf32>
    %82 = vector.shape_cast %81 : vector<8xf32> to vector<8x1xf32>
    %83 = tpu.reciprocal %82 : vector<8x1xf32> -> vector<8x1xf32>
    %84 = vector.broadcast %83 : vector<8x1xf32> to vector<8x8xf32>
    %85 = arith.mulf %80, %84 : vector<8x8xf32>
    %86 = arith.truncf %85 : vector<8x8xf32> to vector<8x8xbf16>
    %cst_39 = arith.constant dense<0.000000e+00> : vector<8x8xf32>
    %87 = tpu.matmul %86, %70, %cst_39 {dimension_numbers = #tpu.dot_dimension_numbers<[1], [0], [0], [1], [0, 0, 1, 1], [], []>} : vector<8x8xbf16>, vector<8x8xbf16>, vector<8x8xf32> -> vector<8x8xf32>
    %88 = arith.truncf %87 : vector<8x8xf32> to vector<8x8xbf16>
    %c0_40 = arith.constant 0 : index
    %c24_41 = arith.constant 24 : index
    %89 = vector.load %arg3[%c0_40, %c24_41] : memref<8x32xbf16, #tpu.memory_space<vmem>>, vector<8x8xbf16>
    tpu.vector_store %arg3[%c0_40, %c24_41], %88 {strides = array<i32>} : memref<8x32xbf16, #tpu.memory_space<vmem>>, vector<8x8xbf16>,
    return
  }
  func.func @transform_0(%arg0: i32) -> (i32, i32) {
    %c0_i32 = arith.constant 0 : i32
    %c0_i32_0 = arith.constant 0 : i32
    return %arg0, %c0_i32 : i32, i32
  }
  func.func @transform_1(%arg0: i32) -> (i32, i32, i32) {
    %c0_i32 = arith.constant 0 : i32
    %c0_i32_0 = arith.constant 0 : i32
    %c0_i32_1 = arith.constant 0 : i32
    return %arg0, %c0_i32, %c0_i32_0 : i32, i32, i32
  }
  func.func @transform_2(%arg0: i32) -> (i32, i32) {
    %c0_i32 = arith.constant 0 : i32
    %c0_i32_0 = arith.constant 0 : i32
    return %arg0, %c0_i32 : i32, i32
  }
}

module attributes {stable_mosaic.version = 11 : i64} {
  func.func @_matmul_kernel(%arg0: i32, %arg1: i32, %arg2: i32, %arg3: memref<16x32xbf16, #tpu.memory_space<vmem>>, %arg4: memref<32x96xbf16, #tpu.memory_space<vmem>>, %arg5: memref<1x96xf32, #tpu.memory_space<vmem>>, %arg6: memref<16x96xbf16, #tpu.memory_space<vmem>>, %arg7: memref<16x96xf32, #tpu.memory_space<vmem>>) attributes {dimension_semantics = [#tpu.dimension_semantics<parallel>, #tpu.dimension_semantics<parallel>, #tpu.dimension_semantics<arbitrary>], iteration_bounds = array<i64: 1, 1, 1>, scalar_prefetch = 0 : i64, scratch_operands = 1 : i64, tpu.core_type = #tpu.core_type<tc>, window_params = [{transform_indices = @transform_0, window_bounds = array<i64: 16, 32>}, {transform_indices = @transform_1, window_bounds = array<i64: 32, 96>}, {transform_indices = @transform_2, window_bounds = array<i64: 1, 96>}, {transform_indices = @transform_3, window_bounds = array<i64: 16, 96>}]} {
    %c0_i32 = arith.constant 0 : i32
    %0 = arith.cmpi eq, %arg2, %c0_i32 : i32
    %1 = arith.extui %0 : i1 to i32
    %c0_i32_0 = arith.constant 0 : i32
    %2 = arith.cmpi ne, %1, %c0_i32_0 : i32
    scf.if %2 {
      %cst_10 = arith.constant 0.000000e+00 : f32
      %12 = vector.broadcast %cst_10 : f32 to vector<16x96xf32>
      %c0_11 = arith.constant 0 : index
      %c0_12 = arith.constant 0 : index
      %13 = vector.load %arg7[%c0_11, %c0_12] : memref<16x96xf32, #tpu.memory_space<vmem>>, vector<16x96xf32>
      tpu.vector_store %arg7[%c0_11, %c0_12], %12 {strides = array<i32>} : memref<16x96xf32, #tpu.memory_space<vmem>>, vector<16x96xf32>,
    } else {
    }
    %c0 = arith.constant 0 : index
    %c0_1 = arith.constant 0 : index
    %3 = vector.load %arg7[%c0, %c0_1] : memref<16x96xf32, #tpu.memory_space<vmem>>, vector<16x96xf32>
    %c0_2 = arith.constant 0 : index
    %c0_3 = arith.constant 0 : index
    %4 = vector.load %arg3[%c0_2, %c0_3] : memref<16x32xbf16, #tpu.memory_space<vmem>>, vector<16x32xbf16>
    %c0_4 = arith.constant 0 : index
    %c0_5 = arith.constant 0 : index
    %5 = vector.load %arg4[%c0_4, %c0_5] : memref<32x96xbf16, #tpu.memory_space<vmem>>, vector<32x96xbf16>
    %cst = arith.constant dense<0.000000e+00> : vector<16x96xf32>
    %6 = tpu.matmul %4, %5, %cst {dimension_numbers = #tpu.dot_dimension_numbers<[1], [0], [0], [1], [0, 0, 1, 1], [], []>} : vector<16x32xbf16>, vector<32x96xbf16>, vector<16x96xf32> -> vector<16x96xf32>
    %7 = arith.addf %3, %6 : vector<16x96xf32>
    %c0_6 = arith.constant 0 : index
    %c0_7 = arith.constant 0 : index
    %8 = vector.load %arg7[%c0_6, %c0_7] : memref<16x96xf32, #tpu.memory_space<vmem>>, vector<16x96xf32>
    tpu.vector_store %arg7[%c0_6, %c0_7], %7 {strides = array<i32>} : memref<16x96xf32, #tpu.memory_space<vmem>>, vector<16x96xf32>,
    %c0_i32_8 = arith.constant 0 : i32
    %9 = arith.cmpi eq, %arg2, %c0_i32_8 : i32
    %10 = arith.extui %9 : i1 to i32
    %c0_i32_9 = arith.constant 0 : i32
    %11 = arith.cmpi ne, %10, %c0_i32_9 : i32
    scf.if %11 {
      %c0_10 = arith.constant 0 : index
      %c0_11 = arith.constant 0 : index
      %12 = vector.load %arg7[%c0_10, %c0_11] : memref<16x96xf32, #tpu.memory_space<vmem>>, vector<16x96xf32>
      %c0_12 = arith.constant 0 : index
      %c0_13 = arith.constant 0 : index
      %13 = vector.load %arg5[%c0_12, %c0_13] : memref<1x96xf32, #tpu.memory_space<vmem>>, vector<1x96xf32>
      %14 = vector.broadcast %13 : vector<1x96xf32> to vector<16x96xf32>
      %15 = arith.addf %12, %14 : vector<16x96xf32>
      %16 = arith.truncf %15 : vector<16x96xf32> to vector<16x96xbf16>
      %c0_14 = arith.constant 0 : index
      %c0_15 = arith.constant 0 : index
      %17 = vector.load %arg6[%c0_14, %c0_15] : memref<16x96xbf16, #tpu.memory_space<vmem>>, vector<16x96xbf16>
      tpu.vector_store %arg6[%c0_14, %c0_15], %16 {strides = array<i32>} : memref<16x96xbf16, #tpu.memory_space<vmem>>, vector<16x96xbf16>,
    } else {
    }
    return
  }
  func.func @transform_0(%arg0: i32, %arg1: i32, %arg2: i32) -> (i32, i32) {
    %c0_i32 = arith.constant 0 : i32
    return %arg0, %arg2 : i32, i32
  }
  func.func @transform_1(%arg0: i32, %arg1: i32, %arg2: i32) -> (i32, i32) {
    %c0_i32 = arith.constant 0 : i32
    return %arg2, %arg1 : i32, i32
  }
  func.func @transform_2(%arg0: i32, %arg1: i32, %arg2: i32) -> (i32, i32) {
    %c0_i32 = arith.constant 0 : i32
    %c0_i32_0 = arith.constant 0 : i32
    return %c0_i32, %arg1 : i32, i32
  }
  func.func @transform_3(%arg0: i32, %arg1: i32, %arg2: i32) -> (i32, i32) {
    %c0_i32 = arith.constant 0 : i32
    return %arg0, %arg1 : i32, i32
  }
}

module attributes {stable_mosaic.version = 11 : i64} {
  func.func @_ffn_ln_kernel(%arg0: i32, %arg1: i32, %arg2: memref<16x32xbf16, #tpu.memory_space<vmem>>, %arg3: memref<32x64xbf16, #tpu.memory_space<vmem>>, %arg4: memref<1x64xf32, #tpu.memory_space<vmem>>, %arg5: memref<64x32xbf16, #tpu.memory_space<vmem>>, %arg6: memref<1x32xf32, #tpu.memory_space<vmem>>, %arg7: memref<1x32xf32, #tpu.memory_space<vmem>>, %arg8: memref<1x32xf32, #tpu.memory_space<vmem>>, %arg9: memref<16x32xbf16, #tpu.memory_space<vmem>>, %arg10: memref<16x32xf32, #tpu.memory_space<vmem>>) attributes {dimension_semantics = [#tpu.dimension_semantics<parallel>, #tpu.dimension_semantics<arbitrary>], iteration_bounds = array<i64: 1, 1>, scalar_prefetch = 0 : i64, scratch_operands = 1 : i64, tpu.core_type = #tpu.core_type<tc>, window_params = [{transform_indices = @transform_0, window_bounds = array<i64: 16, 32>}, {transform_indices = @transform_1, window_bounds = array<i64: 32, 64>}, {transform_indices = @transform_2, window_bounds = array<i64: 1, 64>}, {transform_indices = @transform_3, window_bounds = array<i64: 64, 32>}, {pipeline_mode = #tpu.pipeline_mode<synchronous>, transform_indices = @transform_4, window_bounds = array<i64: 1, 32>}, {pipeline_mode = #tpu.pipeline_mode<synchronous>, transform_indices = @transform_5, window_bounds = array<i64: 1, 32>}, {pipeline_mode = #tpu.pipeline_mode<synchronous>, transform_indices = @transform_6, window_bounds = array<i64: 1, 32>}, {transform_indices = @transform_7, window_bounds = array<i64: 16, 32>}]} {
    %c0_i32 = arith.constant 0 : i32
    %0 = arith.cmpi eq, %arg1, %c0_i32 : i32
    %1 = arith.extui %0 : i1 to i32
    %c0_i32_0 = arith.constant 0 : i32
    %2 = arith.cmpi ne, %1, %c0_i32_0 : i32
    scf.if %2 {
      %cst_19 = arith.constant 0.000000e+00 : f32
      %31 = vector.broadcast %cst_19 : f32 to vector<16x32xf32>
      %c0_20 = arith.constant 0 : index
      %c0_21 = arith.constant 0 : index
      %32 = vector.load %arg10[%c0_20, %c0_21] : memref<16x32xf32, #tpu.memory_space<vmem>>, vector<16x32xf32>
      tpu.vector_store %arg10[%c0_20, %c0_21], %31 {strides = array<i32>} : memref<16x32xf32, #tpu.memory_space<vmem>>, vector<16x32xf32>,
    } else {
    }
    %c0 = arith.constant 0 : index
    %c0_1 = arith.constant 0 : index
    %3 = vector.load %arg2[%c0, %c0_1] : memref<16x32xbf16, #tpu.memory_space<vmem>>, vector<16x32xbf16>
    %c0_2 = arith.constant 0 : index
    %c0_3 = arith.constant 0 : index
    %4 = vector.load %arg3[%c0_2, %c0_3] : memref<32x64xbf16, #tpu.memory_space<vmem>>, vector<32x64xbf16>
    %cst = arith.constant dense<0.000000e+00> : vector<16x64xf32>
    %5 = tpu.matmul %3, %4, %cst {dimension_numbers = #tpu.dot_dimension_numbers<[1], [0], [0], [1], [0, 0, 1, 1], [], []>} : vector<16x32xbf16>, vector<32x64xbf16>, vector<16x64xf32> -> vector<16x64xf32>
    %c0_4 = arith.constant 0 : index
    %c0_5 = arith.constant 0 : index
    %6 = vector.load %arg4[%c0_4, %c0_5] : memref<1x64xf32, #tpu.memory_space<vmem>>, vector<1x64xf32>
    %7 = vector.broadcast %6 : vector<1x64xf32> to vector<16x64xf32>
    %8 = arith.addf %5, %7 : vector<16x64xf32>
    %cst_6 = arith.constant 5.000000e-01 : f32
    %9 = vector.broadcast %cst_6 : f32 to vector<16x64xf32>
    %10 = arith.mulf %9, %8 : vector<16x64xf32>
    %cst_7 = arith.constant 4.471500e-02 : f32
    %11 = vector.broadcast %cst_7 : f32 to vector<16x64xf32>
    %12 = arith.mulf %11, %8 : vector<16x64xf32>
    %13 = arith.mulf %12, %8 : vector<16x64xf32>
    %14 = arith.mulf %13, %8 : vector<16x64xf32>
    %15 = arith.addf %8, %14 : vector<16x64xf32>
    %cst_8 = arith.constant 0.797884583 : f32
    %16 = vector.broadcast %cst_8 : f32 to vector<16x64xf32>
    %17 = arith.mulf %16, %15 : vector<16x64xf32>
    %18 = math.tanh %17 : vector<16x64xf32>
    %cst_9 = arith.constant 1.000000e+00 : f32
    %19 = vector.broadcast %cst_9 : f32 to vector<16x64xf32>
    %20 = arith.addf %19, %18 : vector<16x64xf32>
    %21 = arith.mulf %10, %20 : vector<16x64xf32>
    %c0_10 = arith.constant 0 : index
    %c0_11 = arith.constant 0 : index
    %22 = vector.load %arg10[%c0_10, %c0_11] : memref<16x32xf32, #tpu.memory_space<vmem>>, vector<16x32xf32>
    %23 = arith.truncf %21 : vector<16x64xf32> to vector<16x64xbf16>
    %c0_12 = arith.constant 0 : index
    %c0_13 = arith.constant 0 : index
    %24 = vector.load %arg5[%c0_12, %c0_13] : memref<64x32xbf16, #tpu.memory_space<vmem>>, vector<64x32xbf16>
    %cst_14 = arith.constant dense<0.000000e+00> : vector<16x32xf32>
    %25 = tpu.matmul %23, %24, %cst_14 {dimension_numbers = #tpu.dot_dimension_numbers<[1], [0], [0], [1], [0, 0, 1, 1], [], []>} : vector<16x64xbf16>, vector<64x32xbf16>, vector<16x32xf32> -> vector<16x32xf32>
    %26 = arith.addf %22, %25 : vector<16x32xf32>
    %c0_15 = arith.constant 0 : index
    %c0_16 = arith.constant 0 : index
    %27 = vector.load %arg10[%c0_15, %c0_16] : memref<16x32xf32, #tpu.memory_space<vmem>>, vector<16x32xf32>
    tpu.vector_store %arg10[%c0_15, %c0_16], %26 {strides = array<i32>} : memref<16x32xf32, #tpu.memory_space<vmem>>, vector<16x32xf32>,
    %c0_i32_17 = arith.constant 0 : i32
    %28 = arith.cmpi eq, %arg1, %c0_i32_17 : i32
    %29 = arith.extui %28 : i1 to i32
    %c0_i32_18 = arith.constant 0 : i32
    %30 = arith.cmpi ne, %29, %c0_i32_18 : i32
    scf.if %30 {
      %c0_19 = arith.constant 0 : index
      %c0_20 = arith.constant 0 : index
      %31 = vector.load %arg10[%c0_19, %c0_20] : memref<16x32xf32, #tpu.memory_space<vmem>>, vector<16x32xf32>
      %c0_21 = arith.constant 0 : index
      %c0_22 = arith.constant 0 : index
      %32 = vector.load %arg6[%c0_21, %c0_22] : memref<1x32xf32, #tpu.memory_space<vmem>>, vector<1x32xf32>
      %33 = vector.broadcast %32 : vector<1x32xf32> to vector<16x32xf32>
      %34 = arith.addf %31, %33 : vector<16x32xf32>
      %c0_23 = arith.constant 0 : index
      %c0_24 = arith.constant 0 : index
      %35 = vector.load %arg2[%c0_23, %c0_24] : memref<16x32xbf16, #tpu.memory_space<vmem>>, vector<16x32xbf16>
      %36 = arith.extf %35 : vector<16x32xbf16> to vector<16x32xf32>
      %37 = arith.addf %34, %36 : vector<16x32xf32>
      %c0_25 = arith.constant 0 : index
      %c0_26 = arith.constant 0 : index
      %38 = vector.load %arg7[%c0_25, %c0_26] : memref<1x32xf32, #tpu.memory_space<vmem>>, vector<1x32xf32>
      %c0_27 = arith.constant 0 : index
      %c0_28 = arith.constant 0 : index
      %39 = vector.load %arg8[%c0_27, %c0_28] : memref<1x32xf32, #tpu.memory_space<vmem>>, vector<1x32xf32>
      %cst_29 = arith.constant dense<0.000000e+00> : vector<16xf32>
      %40 = vector.multi_reduction <add>, %37, %cst_29 [1] : vector<16x32xf32> to vector<16xf32>
      %41 = vector.shape_cast %40 : vector<16xf32> to vector<16x1xf32>
      %cst_30 = arith.constant 3.200000e+01 : f32
      %42 = vector.broadcast %cst_30 : f32 to vector<16x1xf32>
      %43 = arith.divf %41, %42 : vector<16x1xf32>
      %44 = vector.broadcast %43 : vector<16x1xf32> to vector<16x32xf32>
      %45 = arith.subf %37, %44 : vector<16x32xf32>
      %46 = arith.mulf %45, %45 : vector<16x32xf32>
      %cst_31 = arith.constant dense<0.000000e+00> : vector<16xf32>
      %47 = vector.multi_reduction <add>, %46, %cst_31 [1] : vector<16x32xf32> to vector<16xf32>
      %48 = vector.shape_cast %47 : vector<16xf32> to vector<16x1xf32>
      %cst_32 = arith.constant 3.200000e+01 : f32
      %49 = vector.broadcast %cst_32 : f32 to vector<16x1xf32>
      %50 = arith.divf %48, %49 : vector<16x1xf32>
      %cst_33 = arith.constant 9.99999974E-6 : f32
      %51 = vector.broadcast %cst_33 : f32 to vector<16x1xf32>
      %52 = arith.addf %50, %51 : vector<16x1xf32>
      %53 = math.rsqrt %52 : vector<16x1xf32>
      %54 = vector.broadcast %53 : vector<16x1xf32> to vector<16x32xf32>
      %55 = arith.mulf %45, %54 : vector<16x32xf32>
      %56 = vector.broadcast %38 : vector<1x32xf32> to vector<16x32xf32>
      %57 = arith.mulf %55, %56 : vector<16x32xf32>
      %58 = vector.broadcast %39 : vector<1x32xf32> to vector<16x32xf32>
      %59 = arith.addf %57, %58 : vector<16x32xf32>
      %60 = arith.truncf %59 : vector<16x32xf32> to vector<16x32xbf16>
      %c0_34 = arith.constant 0 : index
      %c0_35 = arith.constant 0 : index
      %61 = vector.load %arg9[%c0_34, %c0_35] : memref<16x32xbf16, #tpu.memory_space<vmem>>, vector<16x32xbf16>
      tpu.vector_store %arg9[%c0_34, %c0_35], %60 {strides = array<i32>} : memref<16x32xbf16, #tpu.memory_space<vmem>>, vector<16x32xbf16>,
    } else {
    }
    return
  }
  func.func @transform_0(%arg0: i32, %arg1: i32) -> (i32, i32) {
    %c0_i32 = arith.constant 0 : i32
    %c0_i32_0 = arith.constant 0 : i32
    return %arg0, %c0_i32 : i32, i32
  }
  func.func @transform_1(%arg0: i32, %arg1: i32) -> (i32, i32) {
    %c0_i32 = arith.constant 0 : i32
    %c0_i32_0 = arith.constant 0 : i32
    return %c0_i32, %arg1 : i32, i32
  }
  func.func @transform_2(%arg0: i32, %arg1: i32) -> (i32, i32) {
    %c0_i32 = arith.constant 0 : i32
    %c0_i32_0 = arith.constant 0 : i32
    return %c0_i32, %arg1 : i32, i32
  }
  func.func @transform_3(%arg0: i32, %arg1: i32) -> (i32, i32) {
    %c0_i32 = arith.constant 0 : i32
    %c0_i32_0 = arith.constant 0 : i32
    return %arg1, %c0_i32 : i32, i32
  }
  func.func @transform_4(%arg0: i32, %arg1: i32) -> (i32, i32) {
    %c0_i32 = arith.constant 0 : i32
    %c0_i32_0 = arith.constant 0 : i32
    %c0_i32_1 = arith.constant 0 : i32
    return %c0_i32, %c0_i32_0 : i32, i32
  }
  func.func @transform_5(%arg0: i32, %arg1: i32) -> (i32, i32) {
    %c0_i32 = arith.constant 0 : i32
    %c0_i32_0 = arith.constant 0 : i32
    %c0_i32_1 = arith.constant 0 : i32
    return %c0_i32, %c0_i32_0 : i32, i32
  }
  func.func @transform_6(%arg0: i32, %arg1: i32) -> (i32, i32) {
    %c0_i32 = arith.constant 0 : i32
    %c0_i32_0 = arith.constant 0 : i32
    %c0_i32_1 = arith.constant 0 : i32
    return %c0_i32, %c0_i32_0 : i32, i32
  }
  func.func @transform_7(%arg0: i32, %arg1: i32) -> (i32, i32) {
    %c0_i32 = arith.constant 0 : i32
    %c0_i32_0 = arith.constant 0 : i32
    return %arg0, %c0_i32 : i32, i32
  }
}

module attributes {stable_mosaic.version = 11 : i64} {
  func.func @_attn_out_ln_kernel(%arg0: i32, %arg1: memref<16x32xbf16, #tpu.memory_space<vmem>>, %arg2: memref<32x32xbf16, #tpu.memory_space<vmem>>, %arg3: memref<1x32xf32, #tpu.memory_space<vmem>>, %arg4: memref<16x32xbf16, #tpu.memory_space<vmem>>, %arg5: memref<1x32xf32, #tpu.memory_space<vmem>>, %arg6: memref<1x32xf32, #tpu.memory_space<vmem>>, %arg7: memref<16x32xbf16, #tpu.memory_space<vmem>>) attributes {dimension_semantics = [#tpu.dimension_semantics<parallel>], iteration_bounds = array<i64: 1>, scalar_prefetch = 0 : i64, scratch_operands = 0 : i64, tpu.core_type = #tpu.core_type<tc>, window_params = [{transform_indices = @transform_0, window_bounds = array<i64: 16, 32>}, {pipeline_mode = #tpu.pipeline_mode<synchronous>, transform_indices = @transform_1, window_bounds = array<i64: 32, 32>}, {pipeline_mode = #tpu.pipeline_mode<synchronous>, transform_indices = @transform_2, window_bounds = array<i64: 1, 32>}, {transform_indices = @transform_3, window_bounds = array<i64: 16, 32>}, {pipeline_mode = #tpu.pipeline_mode<synchronous>, transform_indices = @transform_4, window_bounds = array<i64: 1, 32>}, {pipeline_mode = #tpu.pipeline_mode<synchronous>, transform_indices = @transform_5, window_bounds = array<i64: 1, 32>}, {transform_indices = @transform_6, window_bounds = array<i64: 16, 32>}]} {
    %c0 = arith.constant 0 : index
    %c0_0 = arith.constant 0 : index
    %0 = vector.load %arg1[%c0, %c0_0] : memref<16x32xbf16, #tpu.memory_space<vmem>>, vector<16x32xbf16>
    %c0_1 = arith.constant 0 : index
    %c0_2 = arith.constant 0 : index
    %1 = vector.load %arg2[%c0_1, %c0_2] : memref<32x32xbf16, #tpu.memory_space<vmem>>, vector<32x32xbf16>
    %cst = arith.constant dense<0.000000e+00> : vector<16x32xf32>
    %2 = tpu.matmul %0, %1, %cst {dimension_numbers = #tpu.dot_dimension_numbers<[1], [0], [0], [1], [0, 0, 1, 1], [], []>} : vector<16x32xbf16>, vector<32x32xbf16>, vector<16x32xf32> -> vector<16x32xf32>
    %c0_3 = arith.constant 0 : index
    %c0_4 = arith.constant 0 : index
    %3 = vector.load %arg3[%c0_3, %c0_4] : memref<1x32xf32, #tpu.memory_space<vmem>>, vector<1x32xf32>
    %4 = vector.broadcast %3 : vector<1x32xf32> to vector<16x32xf32>
    %5 = arith.addf %2, %4 : vector<16x32xf32>
    %c0_5 = arith.constant 0 : index
    %c0_6 = arith.constant 0 : index
    %6 = vector.load %arg4[%c0_5, %c0_6] : memref<16x32xbf16, #tpu.memory_space<vmem>>, vector<16x32xbf16>
    %7 = arith.extf %6 : vector<16x32xbf16> to vector<16x32xf32>
    %8 = arith.addf %5, %7 : vector<16x32xf32>
    %c0_7 = arith.constant 0 : index
    %c0_8 = arith.constant 0 : index
    %9 = vector.load %arg5[%c0_7, %c0_8] : memref<1x32xf32, #tpu.memory_space<vmem>>, vector<1x32xf32>
    %c0_9 = arith.constant 0 : index
    %c0_10 = arith.constant 0 : index
    %10 = vector.load %arg6[%c0_9, %c0_10] : memref<1x32xf32, #tpu.memory_space<vmem>>, vector<1x32xf32>
    %cst_11 = arith.constant dense<0.000000e+00> : vector<16xf32>
    %11 = vector.multi_reduction <add>, %8, %cst_11 [1] : vector<16x32xf32> to vector<16xf32>
    %12 = vector.shape_cast %11 : vector<16xf32> to vector<16x1xf32>
    %cst_12 = arith.constant 3.200000e+01 : f32
    %13 = vector.broadcast %cst_12 : f32 to vector<16x1xf32>
    %14 = arith.divf %12, %13 : vector<16x1xf32>
    %15 = vector.broadcast %14 : vector<16x1xf32> to vector<16x32xf32>
    %16 = arith.subf %8, %15 : vector<16x32xf32>
    %17 = arith.mulf %16, %16 : vector<16x32xf32>
    %cst_13 = arith.constant dense<0.000000e+00> : vector<16xf32>
    %18 = vector.multi_reduction <add>, %17, %cst_13 [1] : vector<16x32xf32> to vector<16xf32>
    %19 = vector.shape_cast %18 : vector<16xf32> to vector<16x1xf32>
    %cst_14 = arith.constant 3.200000e+01 : f32
    %20 = vector.broadcast %cst_14 : f32 to vector<16x1xf32>
    %21 = arith.divf %19, %20 : vector<16x1xf32>
    %cst_15 = arith.constant 9.99999974E-6 : f32
    %22 = vector.broadcast %cst_15 : f32 to vector<16x1xf32>
    %23 = arith.addf %21, %22 : vector<16x1xf32>
    %24 = math.rsqrt %23 : vector<16x1xf32>
    %25 = vector.broadcast %24 : vector<16x1xf32> to vector<16x32xf32>
    %26 = arith.mulf %16, %25 : vector<16x32xf32>
    %27 = vector.broadcast %9 : vector<1x32xf32> to vector<16x32xf32>
    %28 = arith.mulf %26, %27 : vector<16x32xf32>
    %29 = vector.broadcast %10 : vector<1x32xf32> to vector<16x32xf32>
    %30 = arith.addf %28, %29 : vector<16x32xf32>
    %31 = arith.truncf %30 : vector<16x32xf32> to vector<16x32xbf16>
    %c0_16 = arith.constant 0 : index
    %c0_17 = arith.constant 0 : index
    %32 = vector.load %arg7[%c0_16, %c0_17] : memref<16x32xbf16, #tpu.memory_space<vmem>>, vector<16x32xbf16>
    tpu.vector_store %arg7[%c0_16, %c0_17], %31 {strides = array<i32>} : memref<16x32xbf16, #tpu.memory_space<vmem>>, vector<16x32xbf16>,
    return
  }
  func.func @transform_0(%arg0: i32) -> (i32, i32) {
    %c0_i32 = arith.constant 0 : i32
    %c0_i32_0 = arith.constant 0 : i32
    return %arg0, %c0_i32 : i32, i32
  }
  func.func @transform_1(%arg0: i32) -> (i32, i32) {
    %c0_i32 = arith.constant 0 : i32
    %c0_i32_0 = arith.constant 0 : i32
    %c0_i32_1 = arith.constant 0 : i32
    return %c0_i32, %c0_i32_0 : i32, i32
  }
  func.func @transform_2(%arg0: i32) -> (i32, i32) {
    %c0_i32 = arith.constant 0 : i32
    %c0_i32_0 = arith.constant 0 : i32
    %c0_i32_1 = arith.constant 0 : i32
    return %c0_i32, %c0_i32_0 : i32, i32
  }
  func.func @transform_3(%arg0: i32) -> (i32, i32) {
    %c0_i32 = arith.constant 0 : i32
    %c0_i32_0 = arith.constant 0 : i32
    return %arg0, %c0_i32 : i32, i32
  }
  func.func @transform_4(%arg0: i32) -> (i32, i32) {
    %c0_i32 = arith.constant 0 : i32
    %c0_i32_0 = arith.constant 0 : i32
    %c0_i32_1 = arith.constant 0 : i32
    return %c0_i32, %c0_i32_0 : i32, i32
  }
  func.func @transform_5(%arg0: i32) -> (i32, i32) {
    %c0_i32 = arith.constant 0 : i32
    %c0_i32_0 = arith.constant 0 : i32
    %c0_i32_1 = arith.constant 0 : i32
    return %c0_i32, %c0_i32_0 : i32, i32
  }
  func.func @transform_6(%arg0: i32) -> (i32, i32) {
    %c0_i32 = arith.constant 0 : i32
    %c0_i32_0 = arith.constant 0 : i32
    return %arg0, %c0_i32 : i32, i32
  }
}

module attributes {stable_mosaic.version = 11 : i64} {
  func.func @_pool_cls_kernel(%arg0: memref<2x32xbf16, #tpu.memory_space<vmem>>, %arg1: memref<32x32xbf16, #tpu.memory_space<vmem>>, %arg2: memref<1x32xf32, #tpu.memory_space<vmem>>, %arg3: memref<32x2xbf16, #tpu.memory_space<vmem>>, %arg4: memref<1x2xf32, #tpu.memory_space<vmem>>, %arg5: memref<2x2xf32, #tpu.memory_space<vmem>>) attributes {dimension_semantics = [], scalar_prefetch = 0 : i64, scratch_operands = 0 : i64, tpu.core_type = #tpu.core_type<tc>} {
    %c0 = arith.constant 0 : index
    %c0_0 = arith.constant 0 : index
    %0 = vector.load %arg0[%c0, %c0_0] : memref<2x32xbf16, #tpu.memory_space<vmem>>, vector<2x32xbf16>
    %c0_1 = arith.constant 0 : index
    %c0_2 = arith.constant 0 : index
    %1 = vector.load %arg1[%c0_1, %c0_2] : memref<32x32xbf16, #tpu.memory_space<vmem>>, vector<32x32xbf16>
    %cst = arith.constant dense<0.000000e+00> : vector<2x32xf32>
    %2 = tpu.matmul %0, %1, %cst {dimension_numbers = #tpu.dot_dimension_numbers<[1], [0], [0], [1], [0, 0, 1, 1], [], []>} : vector<2x32xbf16>, vector<32x32xbf16>, vector<2x32xf32> -> vector<2x32xf32>
    %c0_3 = arith.constant 0 : index
    %c0_4 = arith.constant 0 : index
    %3 = vector.load %arg2[%c0_3, %c0_4] : memref<1x32xf32, #tpu.memory_space<vmem>>, vector<1x32xf32>
    %4 = vector.broadcast %3 : vector<1x32xf32> to vector<2x32xf32>
    %5 = arith.addf %2, %4 : vector<2x32xf32>
    %6 = math.tanh %5 : vector<2x32xf32>
    %7 = arith.truncf %6 : vector<2x32xf32> to vector<2x32xbf16>
    %c0_5 = arith.constant 0 : index
    %c0_6 = arith.constant 0 : index
    %8 = vector.load %arg3[%c0_5, %c0_6] : memref<32x2xbf16, #tpu.memory_space<vmem>>, vector<32x2xbf16>
    %cst_7 = arith.constant dense<0.000000e+00> : vector<2x2xf32>
    %9 = tpu.matmul %7, %8, %cst_7 {dimension_numbers = #tpu.dot_dimension_numbers<[1], [0], [0], [1], [0, 0, 1, 1], [], []>} : vector<2x32xbf16>, vector<32x2xbf16>, vector<2x2xf32> -> vector<2x2xf32>
    %c0_8 = arith.constant 0 : index
    %c0_9 = arith.constant 0 : index
    %10 = vector.load %arg4[%c0_8, %c0_9] : memref<1x2xf32, #tpu.memory_space<vmem>>, vector<1x2xf32>
    %11 = vector.broadcast %10 : vector<1x2xf32> to vector<2x2xf32>
    %12 = arith.addf %9, %11 : vector<2x2xf32>
    %c0_10 = arith.constant 0 : index
    %c0_11 = arith.constant 0 : index
    %13 = vector.load %arg5[%c0_10, %c0_11] : memref<2x2xf32, #tpu.memory_space<vmem>>, vector<2x2xf32>
    tpu.vector_store %arg5[%c0_10, %c0_11], %12 {strides = array<i32>} : memref<2x2xf32, #tpu.memory_space<vmem>>, vector<2x2xf32>,
    return
  }
}

</mosaic_0001>

<bundles_post_ra>
// kernel: tpu_custom_call.1
= control target key start
LH: loop header
LB: loop body
LE: loop exit
PB: predicated region body
PF: predicated region fallthrough
CT: control target
= control target key end

     0   :  { %6 = vsyncpa [#allocation3], 0  ;;  %s131_s0 = inlined_call_operand.hbm [shape: f32[8,128], index: 0, kind: input, shape index: {}]   ;;  %s132_s1 = inlined_call_operand.hbm [shape: f32[8,128], index: 1, kind: output, shape index: {}]  }
   0x1   :  { %7 = vsyncpa [#allocation4], 0  ;;  %s95_s6 = smov [#allocation2]   ;;  %s47_s10 = scalar_lea.hbm %s131_s0, 128 }
   0x2   :  { %s14_s7 = sshll.u32 %s95_s6, 4  ;;  %p48_p0 = scmp.ne.s32.totalorder %s131_s0, %s47_s10  ;;  %s15_s7 = int_to_ptr.vmem [resolvable:$true] %s14_s7 }
   0x3   :  { %p51_p1 = scmp.lt.u32.totalorder %s47_s10, %s131_s0 }
   0x5   :  { %p53_p2 = pnand %p51_p1, %p48_p0 }
   0x7   :  { %56 = shalt.err (!%p53_p2)
}
   0x8   :  { %s57_s15 = scalar_lea.vmem %s15_s7, 128  ;;  %p62_p4 = scmp.lt.s32.totalorder %s15_s7, %s15_s7 }
   0x9   :  { %p58_p3 = scmp.ne.s32.totalorder %s15_s7, %s57_s15  ;;  %p63_p5 = scmp.lt.s32.totalorder %s57_s15, %s57_s15 }
   0xb   :  { %p64_p6 = por %p63_p5, %p62_p4 }
   0xd   :  { %p65_p7 = pnand %p64_p6, %p58_p3 }
   0xf   :  { %68 = shalt.err (!%p65_p7)
}
  0x10   :  { %17 = dma.hbm_to_vmem [thread:$0]  %s131_s0, 128, %s15_s7, [#allocation3]  }
  0x11   :  { %91 = dma.done.wait [#allocation3], 128  }
  0x12   :  { %92 = vsyncadd [#allocation3], 4294967168  ;;  %v21_v0 = vld [vmem:[#allocation2] sm:$0xff]  ;;  %s96_s18 = smov [#allocation5]  }
  0x13   :  { %v23_v1 = vmul.f32 0.70710677, %v21_v0  ;;  %v22_v2 = vmul.f32 0.5, %v21_v0  ;;  %s34_s19 = sshll.u32 %s96_s18, 4  ;;  %s35_s19 = int_to_ptr.vmem [resolvable:$true] %s34_s19 }
  0x14   :  { %s69_s20 = scalar_lea.vmem %s35_s19, 128  ;;  %p74_p9 = scmp.lt.s32.totalorder %s35_s19, %s35_s19 }
  0x15   :  { %45 = verf.f32 %v23_v1  ;;  %p70_p8 = scmp.ne.s32.totalorder %s35_s19, %s69_s20  ;;  %p75_p10 = scmp.lt.s32.totalorder %s69_s20, %s69_s20 }
  0x17   :  { %p76_p11 = por %p75_p10, %p74_p9 }
  0x19   :  { %p77_p12 = pnand %p76_p11, %p70_p8 }
  0x1f   :  { %v46_v3 = vpop.eup %45 }
  0x20   :  { %v25_v4 = vadd.f32 1.0, %v46_v3 }
  0x22   :  { %v26_v5 = vmul.f32 %v25_v4, %v22_v2 }
  0x24   :  { %27 = vst [vmem:[#allocation5] sm:$0xff] %v26_v5 }
  0x25   :  { %80 = shalt.err (!%p77_p12)
}
  0x26   :  { %s81_s22 = scalar_lea.hbm %s132_s1, 128 }
  0x27   :  { %p82_p13 = scmp.ne.s32.totalorder %s132_s1, %s81_s22  ;;  %p85_p0 = scmp.lt.u32.totalorder %s81_s22, %s132_s1 }
  0x29   :  { %p87_p1 = pnand %p85_p0, %p82_p13 }
  0x2b   :  { %90 = shalt.err (!%p87_p1)
}
  0x2c   :  { %37 = dma.vmem_to_hbm [thread:$0]  %s35_s19, 128, %s132_s1, [#allocation4]  }
  0x2d   :  { %93 = dma.done.wait [#allocation4], 128  }
  0x2e   :  { %94 = vsyncadd [#allocation4], 4294967168 }
  0x2f   :  { %41 = vsyncpa [#allocation3], 1 }
  0x30   :  { %42 = vsyncpa [#allocation4], 1 }

// kernel: tpu_custom_call.1
= control target key start
LH: loop header
LB: loop body
LE: loop exit
PB: predicated region body
PF: predicated region fallthrough
CT: control target
= control target key end

     0   :  { %6 = vsyncpa [#allocation3], 0  ;;  %s124_s0 = inlined_call_operand.hbm [shape: f32[8,128], index: 0, kind: input, shape index: {}]   ;;  %s125_s1 = inlined_call_operand.hbm [shape: f32[8,128], index: 1, kind: output, shape index: {}]  }
   0x1   :  { %7 = vsyncpa [#allocation4], 0  ;;  %s88_s6 = smov [#allocation2]   ;;  %s40_s10 = scalar_lea.hbm %s124_s0, 128 }
   0x2   :  { %s14_s7 = sshll.u32 %s88_s6, 4  ;;  %p41_p0 = scmp.ne.s32.totalorder %s124_s0, %s40_s10  ;;  %s15_s7 = int_to_ptr.vmem [resolvable:$true] %s14_s7 }
   0x3   :  { %p44_p1 = scmp.lt.u32.totalorder %s40_s10, %s124_s0 }
   0x5   :  { %p46_p2 = pnand %p44_p1, %p41_p0 }
   0x7   :  { %49 = shalt.err (!%p46_p2)
}
   0x8   :  { %s50_s15 = scalar_lea.vmem %s15_s7, 128  ;;  %p55_p4 = scmp.lt.s32.totalorder %s15_s7, %s15_s7 }
   0x9   :  { %p51_p3 = scmp.ne.s32.totalorder %s15_s7, %s50_s15  ;;  %p56_p5 = scmp.lt.s32.totalorder %s50_s15, %s50_s15 }
   0xb   :  { %p57_p6 = por %p56_p5, %p55_p4 }
   0xd   :  { %p58_p7 = pnand %p57_p6, %p51_p3 }
   0xf   :  { %61 = shalt.err (!%p58_p7)
}
  0x10   :  { %17 = dma.hbm_to_vmem [thread:$0]  %s124_s0, 128, %s15_s7, [#allocation3]  }
  0x11   :  { %84 = dma.done.wait [#allocation3], 128  }
  0x12   :  { %85 = vsyncadd [#allocation3], 4294967168  ;;  %s89_s18 = smov [#allocation5]   ;;  %v21_v0 = vld [vmem:[#allocation2] sm:$0xff] }
  0x13   :  { %s29_s19 = sshll.u32 %s89_s18, 4  ;;  %22 = vst [vmem:[#allocation5] sm:$0xff] %v21_v0  ;;  %s30_s19 = int_to_ptr.vmem [resolvable:$true] %s29_s19 }
  0x14   :  { %s62_s20 = scalar_lea.vmem %s30_s19, 128  ;;  %p67_p9 = scmp.lt.s32.totalorder %s30_s19, %s30_s19 }
  0x15   :  { %p63_p8 = scmp.ne.s32.totalorder %s30_s19, %s62_s20  ;;  %p68_p10 = scmp.lt.s32.totalorder %s62_s20, %s62_s20 }
  0x17   :  { %p69_p11 = por %p68_p10, %p67_p9 }
  0x19   :  { %p70_p12 = pnand %p69_p11, %p63_p8 }
  0x1b   :  { %73 = shalt.err (!%p70_p12)
}
  0x1c   :  { %s74_s23 = scalar_lea.hbm %s125_s1, 128 }
  0x1d   :  { %p75_p13 = scmp.ne.s32.totalorder %s125_s1, %s74_s23  ;;  %p78_p0 = scmp.lt.u32.totalorder %s74_s23, %s125_s1 }
  0x1f   :  { %p80_p1 = pnand %p78_p0, %p75_p13 }
  0x21   :  { %83 = shalt.err (!%p80_p1)
}
  0x22   :  { %32 = dma.vmem_to_hbm [thread:$0]  %s30_s19, 128, %s125_s1, [#allocation4]  }
  0x23   :  { %86 = dma.done.wait [#allocation4], 128  }
  0x24   :  { %87 = vsyncadd [#allocation4], 4294967168 }
  0x25   :  { %36 = vsyncpa [#allocation3], 1 }
  0x26   :  { %37 = vsyncpa [#allocation4], 1 }

// kernel: roberta_forward.10
= control target key start
LH: loop header
LB: loop body
LE: loop exit
PB: predicated region body
PF: predicated region fallthrough
CT: control target
= control target key end

     0   :  { %8 = vsyncpa [#allocation3], 0  ;;  %s328_s0 = inlined_call_operand.hbm [shape: f32[16,32], index: 0, kind: input, shape index: {}]   ;;  %s329_s1 = inlined_call_operand.hbm [shape: f32[1,32], index: 1, kind: input, shape index: {}]   ;;  %s330_s2 = inlined_call_operand.hbm [shape: f32[1,32], index: 2, kind: input, shape index: {}]   ;;  %s331_s3 = inlined_call_operand.hbm [shape: bf16[16,32], index: 3, kind: output, shape index: {}]  }
   0x1   :  { %9 = vsyncpa [#allocation6], 0 }
   0x2   :  { %10 = vsyncpa [#allocation4], 0  ;;  %s241_s12 = smov [#allocation5]   ;;  %s242_s14 = smov [#allocation2]  }
   0x3   :  { %s29_s13 = sshll.u32 %s241_s12, 4  ;;  %s16_s15 = sshll.u32 %s242_s14, 4  ;;  %s30_s13 = int_to_ptr.vmem [resolvable:$true] %s29_s13  ;;  %s269_s15 = int_to_ptr.vmem [resolvable:$true] %s16_s15 }
   0x4   :  { %s147_s18 = scalar_lea.hbm %s329_s1, 16 }
   0x5   :  { %p148_p0 = scmp.ne.s32.totalorder %s329_s1, %s147_s18  ;;  %p151_p1 = scmp.lt.u32.totalorder %s147_s18, %s329_s1 }
   0x7   :  { %p153_p2 = pnand %p151_p1, %p148_p0 }
   0x9   :  { %156 = shalt.err (!%p153_p2)
}
   0xa   :  { %s157_s23 = scalar_lea.vmem %s30_s13, 16  ;;  %s161_s24 = scalar_lea.vmem %s30_s13, 32 }
   0xb   :  { %p158_p3 = scmp.ne.s32.totalorder %s30_s13, %s157_s23  ;;  %p162_p4 = scmp.lt.s32.totalorder %s30_s13, %s30_s13 }
   0xc   :  { %p163_p5 = scmp.lt.s32.totalorder %s161_s24, %s157_s23 }
   0xe   :  { %p164_p6 = por %p163_p5, %p162_p4 }
  0x10   :  { %p165_p7 = pnand %p164_p6, %p158_p3 }
  0x12   :  { %168 = shalt.err (!%p165_p7)
}
  0x13   :  { %32 = dma.hbm_to_vmem [thread:$0]  %s329_s1, 16, %s30_s13, [#allocation6]  }
  0x14   :  { %s169_s29 = scalar_lea.hbm %s328_s0, 256 }
  0x15   :  { %p170_p8 = scmp.ne.s32.totalorder %s328_s0, %s169_s29  ;;  %p173_p9 = scmp.lt.u32.totalorder %s169_s29, %s328_s0 }
  0x17   :  { %p175_p10 = pnand %p173_p9, %p170_p8 }
  0x19   :  { %178 = shalt.err (!%p175_p10)
}
  0x1a   :  { %s179_s7 = scalar_lea.vmem %s269_s15, 256  ;;  %p184_p12 = scmp.lt.s32.totalorder %s269_s15, %s269_s15 }
  0x1b   :  { %p180_p11 = scmp.ne.s32.totalorder %s269_s15, %s179_s7  ;;  %p185_p13 = scmp.lt.s32.totalorder %s179_s7, %s179_s7 }
  0x1d   :  { %p186_p0 = por %p185_p13, %p184_p12 }
  0x1f   :  { %p187_p1 = pnand %p186_p0, %p180_p11 }
  0x21   :  { %190 = shalt.err (!%p187_p1)
}
  0x22   :  { %s243_s1 = smov 128   ;;  %s244_s8 = smov 8  }
  0x23   :  { %22 = dma.hbm_to_vmem [thread:$0]  %s328_s0, 256, %s269_s15, [#allocation3], %s243_s1, %s243_s1, %s244_s8  }
  0x24   :  { %s245_s11 = smov [#allocation7]   ;;  %s191_s16 = scalar_lea.hbm %s330_s2, 16 }
  0x25   :  { %s39_s12 = sshll.u32 %s245_s11, 4  ;;  %p192_p2 = scmp.ne.s32.totalorder %s330_s2, %s191_s16  ;;  %s40_s12 = int_to_ptr.vmem [resolvable:$true] %s39_s12 }
  0x26   :  { %p195_p3 = scmp.lt.u32.totalorder %s191_s16, %s330_s2 }
  0x28   :  { %p197_p4 = pnand %p195_p3, %p192_p2 }
  0x2a   :  { %200 = shalt.err (!%p197_p4)
}
  0x2b   :  { %s201_s21 = scalar_lea.vmem %s40_s12, 16  ;;  %s205_s0 = scalar_lea.vmem %s40_s12, 32 }
  0x2c   :  { %p202_p5 = scmp.ne.s32.totalorder %s40_s12, %s201_s21  ;;  %p206_p6 = scmp.lt.s32.totalorder %s40_s12, %s40_s12 }
  0x2d   :  { %p207_p7 = scmp.lt.s32.totalorder %s205_s0, %s201_s21 }
  0x2f   :  { %p208_p8 = por %p207_p7, %p206_p6 }
  0x31   :  { %p209_p9 = pnand %p208_p8, %p202_p5 }
  0x33   :  { %212 = shalt.err (!%p209_p9)
}
  0x34   :  { %42 = dma.hbm_to_vmem [thread:$0]  %s330_s2, 16, %s40_s12, [#allocation6]  }
  0x35   :  { %235 = dma.done.wait [#allocation3], 256  }
  0x36   :  { %236 = vsyncadd [#allocation3], 4294967040 }
  0x37   :  { %237 = dma.done.wait [#allocation6], 32  }
  0x38   :  { %238 = vsyncadd [#allocation6], 4294967264  ;;  %vm56_vm0 = vcmask 261120   ;;  %v52_v0 = vld [vmem:[#allocation2] sm:$0xff]  ;;  %v53_v1 = vld [vmem:[#allocation2 + $0x8] sm:$0xff]  ;;  %vm108_vm1 = vcmask 257024  }
  0x39   :  { %v57_v2 = vsel %vm56_vm0, %v52_v0, 0.0  ;;  %v60_v3 = vsel %vm56_vm0, %v53_v1, 0.0  ;;  %v129_v21 = vld [vmem:[#allocation5] ss:$0 sm:$0xff]  ;;  %v130_v23 = vld [vmem:[#allocation7] ss:$0 sm:$0xff] }
  0x3a   :  { %58 = vadd.xlane.f32.xlu0 %v57_v2  ;;  %s246_s2 = smov [#allocation8]  }
  0x3b   :  { %s116_s23 = sshll.u32 %s246_s2, 4  ;;  %s117_s23 = int_to_ptr.vmem [resolvable:$true] %s116_s23 }
  0x3c   :  { %s213_s24 = scalar_lea.vmem %s117_s23, 128  ;;  %p218_p11 = scmp.lt.s32.totalorder %s117_s23, %s117_s23 }
  0x3d   :  { %p214_p10 = scmp.ne.s32.totalorder %s117_s23, %s213_s24  ;;  %p219_p12 = scmp.lt.s32.totalorder %s213_s24, %s213_s24 }
  0x3e   :  { %61 = vadd.xlane.f32.xlu0 %v60_v3 }
  0x3f   :  { %p220_p13 = por %p219_p12, %p218_p11 }
  0x41   :  { %p221_p0 = pnand %p220_p13, %p214_p10 }
  0xc7   :  { %v59_v4 = vpop.xlane.xlu0 %58 }
  0xc8   :  { %v64_v5 = vmul.f32 0.03125, %v59_v4 }
  0xca   :  { %v66_v6 = vsub.f32 %v52_v0, %v64_v5 }
  0xcb   :  { %v62_v7 = vpop.xlane.xlu0 %61 }
  0xcc   :  { %v65_v8 = vmul.f32 0.03125, %v62_v7  ;;  %v68_v9 = vmul.f32 %v66_v6, %v66_v6 }
  0xce   :  { %v67_v10 = vsub.f32 %v53_v1, %v65_v8  ;;  %v70_v11 = vsel %vm56_vm0, %v68_v9, 0.0 }
  0xcf   :  { %71 = vadd.xlane.f32.xlu1 %v70_v11 }
  0xd0   :  { %v69_v12 = vmul.f32 %v67_v10, %v67_v10 }
  0xd2   :  { %v73_v13 = vsel %vm56_vm0, %v69_v12, 0.0 }
  0xd3   :  { %74 = vadd.xlane.f32.xlu1 %v73_v13 }
 0x15c   :  { %v72_v14 = vpop.xlane.xlu1 %71 }
 0x15d   :  { %v76_v15 = vmul.f32 0.03125, %v72_v14 }
 0x15f   :  { %v78_v16 = vadd.f32 1e-05, %v76_v15 }
 0x160   :  { %v75_v17 = vpop.xlane.xlu1 %74 }
 0x161   :  { %143 = vrsqrt.f32 %v78_v16  ;;  %v77_v18 = vmul.f32 0.03125, %v75_v17 }
 0x163   :  { %v79_v19 = vadd.f32 1e-05, %v77_v18 }
 0x165   :  { %145 = vrsqrt.f32 %v79_v19 }
 0x16b   :  { %v144_v20 = vpop.eup %143 }
 0x16c   :  { %v82_v22 = vmul.f32 %v144_v20, %v66_v6 }
 0x16e   :  { %v90_v24 = vmul.f32 %v129_v21, %v82_v22 }
 0x16f   :  { %v146_v25 = vpop.eup %145 }
 0x170   :  { %v83_v26 = vmul.f32 %v146_v25, %v67_v10  ;;  %v98_v27 = vadd.f32 %v130_v23, %v90_v24 }
 0x172   :  { %v91_v28 = vmul.f32 %v129_v21, %v83_v26  ;;  %v133_v29 = vpack.c.bf16 %v98_v27, %v98_v27 }
 0x174   :  { %v99_v30 = vadd.f32 %v130_v23, %v91_v28  ;;  %109 = vst.msk [vmem:[#allocation8] sm:$0xf] %vm108_vm1, %v133_v29 }
 0x176   :  { %v134_v31 = vpack.c.bf16 %v99_v30, %v99_v30 }
 0x178   :  { %110 = vst.msk [vmem:[#allocation8 + $0x4] sm:$0xf] %vm108_vm1, %v134_v31 }
 0x179   :  { %224 = shalt.err (!%p221_p0)
}
 0x17a   :  { %s225_s27 = scalar_lea.hbm %s331_s3, 128 }
 0x17b   :  { %p226_p1 = scmp.ne.s32.totalorder %s331_s3, %s225_s27  ;;  %p229_p2 = scmp.lt.u32.totalorder %s225_s27, %s331_s3 }
 0x17d   :  { %p231_p3 = pnand %p229_p2, %p226_p1 }
 0x17f   :  { %234 = shalt.err (!%p231_p3)
}
 0x180   :  { %s247_s5 = smov 64   ;;  %s248_s6 = smov 4  }
 0x181   :  { %122 = dma.vmem_to_hbm [thread:$0]  %s117_s23, 128, %s331_s3, [#allocation4], %s247_s5, %s247_s5, %s248_s6  }
 0x182   :  { %239 = dma.done.wait [#allocation4], 128  }
 0x183   :  { %240 = vsyncadd [#allocation4], 4294967168 }
 0x184   :  { %126 = vsyncpa [#allocation3], 1 }
 0x185   :  { %127 = vsyncpa [#allocation6], 1 }
 0x186   :  { %128 = vsyncpa [#allocation4], 1 }

// kernel: roberta_forward.12
= control target key start
LH: loop header
LB: loop body
LE: loop exit
PB: predicated region body
PF: predicated region fallthrough
CT: control target
= control target key end

     0   :  { %7 = vsyncpa [#allocation3], 0  ;;  %s1438_s0 = inlined_call_operand.hbm [shape: bf16[16,96], index: 0, kind: input, shape index: {}]   ;;  %s1439_s1 = inlined_call_operand.hbm [shape: f32[2,1,8], index: 1, kind: input, shape index: {}]   ;;  %s1440_s2 = inlined_call_operand.hbm [shape: bf16[16,32], index: 2, kind: output, shape index: {}]  }
   0x1   :  { %9 = vsyncpa [#allocation3 + $0x1], 0 }
   0x2   :  { %10 = vsyncpa [#allocation6], 0 }
   0x3   :  { %12 = vsyncpa [#allocation6 + $0x1], 0 }
   0x4   :  { %13 = vsyncpa [#allocation4], 0 }
   0x5   :  { %15 = vsyncpa [#allocation4 + $0x1], 0  ;;  %s1148_s9 = smov 0   ;;  %s1150_s10 = smov 0  }
   0x6   :  { %s1152_s11 = smov 0   ;;  %s1154_s12 = smov 0  }
   0x7 LB: > { %s1169_s13 = sadd.s32 4294967295, %s1112_s12   ;;  %s799_s14 = sadd.s32 4294967294, %s1112_s12   ;;  %s1112_s12 = sphi %s1154_s12, %s1459_s12   ;;  %s1108_s11 = sphi %s1152_s11, %s1458_s11   ;;  %s1104_s10 = sphi %s1150_s10, %s1457_s10   ;;  %s1100_s9 = sphi %s1148_s9, %s1456_s9  }
   0x8   : > { %s1173_s15 = sadd.s32 1, %s1112_s12   ;;  %s28_s16 = sadd.s32 1, %s1108_s11 }
   0x9   : > { %s25_s17 = ssub.s32 %s1112_s12, %s1173_s15  ;;  %p35_p0 = scmp.ne.s32.totalorder %s1108_s11, %s1104_s10 }
   0xa   : > { %p26_p1 = scmp.eq.s32.totalorder %s25_s17, 0  ;;  %p36_p2 = scmp.eq.s32.totalorder %s1112_s12, 0 }
   0xb   : > { %p41_p3 = scmp.ne.s32.totalorder %s1104_s10, %s1100_s9  ;;  %p42_p4 = scmp.eq.s32.totalorder %s1169_s13, 0 }
   0xc   : > { %s1185_s18 = scalar_select %p26_p1, %s1108_s11, %s28_s16  }
   0xd   : > { %p1187_p5 = por %p36_p2, %p35_p0  ;;  %p1191_p6 = por %p42_p4, %p41_p3 }
   0xe   : > { %p91_p7 = scmp.eq.s32.totalorder %s1169_s13, 1  ;;  %p97_p8 = scmp.eq.s32.totalorder %s799_s14, 1 }
   0xf   : > { %s1444_s20 = scalar_select %p1191_p6, 1, 0 }
  0x10   : > { %p912_p10 = scmp.lt.s32.totalorder %s1112_s12, 2  ;;  %p1198_p11 = por %p91_p7, %p35_p0 }
  0x11   : > { %p1202_p12 = por %p97_p8, %p41_p3  ;;  %s1207_s23 = sand.u32 1, %s1108_s11  }
  0x12   : > { %s1445_s21 = scalar_select %p1198_p11, 1, 0 }
  0x13   : > { %s1446_s22 = scalar_select %p1202_p12, 1, 0 }
  0x14   : > { %s803_s24 = sshll.u32 %s1112_s12, 6  ;;  %s802_s25 = sshll.u32 %s1207_s23, 2 }
  0x15   : > { %s1214_s28 = scalar_lea.hbm %s1438_s0, %s803_s24  ;;  %s121_s29 = scalar_lea.vmem [#allocation2], %s802_s25 }
  0x16   : > { %s128_s30 = sshll.u32 %s121_s29, 4  ;;  %p1218_p13 = pnand %p912_p10, %p1187_p5  ;;  %s1222_s30 = int_to_ptr.vmem [resolvable:$true] %s128_s30 }
  0x17   : > { %s118_s4 = scalar_lea.sflag [#allocation3], %s1207_s23  ;;  %s982_s5 = scalar_lea.hbm %s1214_s28, 64 }
  0x18   : > { %p983_p2 = scmp.ne.s32.totalorder %s1214_s28, %s982_s5  ;;  %p984_p3 = pneg %p1218_p13 }
  0x19   : > { %s987_s8 = scalar_lea.hbm %s1438_s0, 128  ;;  %p988_p5 = scmp.lt.u32.totalorder %s1214_s28, %s1438_s0 }
  0x1a   : > { %p985_p4 = pnand %p984_p3, %p983_p2  ;;  %p989_p8 = scmp.lt.u32.totalorder %s987_s8, %s982_s5 }
  0x1b   : > { %p991_p9 = scmp.lt.u32.totalorder %s982_s5, %s1214_s28 }
  0x1c   : > { %p986_p7 = pneg %p985_p4  ;;  %p990_p10 = por %p989_p8, %p988_p5 }
  0x1e   : > { %p992_p0 = por %p991_p9, %p990_p10 }
  0x20   : > { %p993_p1 = pnand %p992_p0, %p986_p7 }
  0x22   : > { %996 = shalt.err (!%p993_p1)
}
  0x23   : > { %s997_s17 = scalar_lea.vmem %s1222_s30, 64  ;;  %s1114_s19 = smov [#allocation2]  }
  0x24   : > { %p998_p2 = scmp.ne.s32.totalorder %s1222_s30, %s997_s17  ;;  %s1002_s24 = sshll.u32 %s1114_s19, 4  ;;  %s1003_s24 = int_to_ptr.vmem [resolvable:$false] %s1002_s24 }
  0x25   : > { %s1004_s25 = scalar_lea.vmem %s1003_s24, 128  ;;  %p1005_p11 = scmp.lt.s32.totalorder %s1222_s30, %s1003_s24 }
  0x26   : > { %p1000_p4 = pnand %p998_p2, %p984_p3  ;;  %p1006_p5 = scmp.lt.s32.totalorder %s1004_s25, %s997_s17 }
  0x28   : > { %p1001_p12 = pneg %p1000_p4  ;;  %p1007_p8 = por %p1006_p5, %p1005_p11 }
  0x2a   : > { %p1008_p9 = pnand %p1007_p8, %p1001_p12 }
  0x2c   : > { %1011 = shalt.err (!%p1008_p9)
}
  0x2d   : > { %904 = dma.hbm_to_vmem [thread:$0]  (!%p1218_p13), %s1214_s28, 64, %s1222_s30, %s118_s4  }
  0x2e   : > { %p1448_p0 = scmp.lt.s32.totalorder %s1112_s12, 3  ;;  %p1449_p1 = scmp.ge.s32.totalorder %s1112_s12, 1 }
  0x2f   : > { %s804_s27 = sshll.u32 %s1112_s12, 4  ;;  %s138_s7 = scalar_lea.vmem [#allocation5], %s1207_s23 }
  0x30   : > { %p1256_p7 = pnand %p1449_p1, %p1448_p0  ;;  %s1264_s6 = scalar_lea.hbm %s1439_s1, %s804_s27 }
  0x31   : > { %s145_s8 = sshll.u32 %s138_s7, 4  ;;  %s136_s28 = scalar_lea.sflag [#allocation6], %s1207_s23  ;;  %s146_s8 = int_to_ptr.vmem [resolvable:$true] %s145_s8 }
  0x32   : > { %s1450_s26 = scalar_select %p1256_p7, 1, 0 }
  0x33   : > { %s1012_s30 = scalar_lea.hbm %s1264_s6, 16  ;;  %s1017_s16 = scalar_lea.hbm %s1439_s1, 32 }
  0x34   : > { %p1013_p11 = scmp.ne.s32.totalorder %s1264_s6, %s1012_s30  ;;  %p1018_p2 = scmp.lt.u32.totalorder %s1264_s6, %s1439_s1 }
  0x35   : > { %p1019_p4 = scmp.lt.u32.totalorder %s1017_s16, %s1012_s30  ;;  %p1021_p8 = scmp.lt.u32.totalorder %s1012_s30, %s1264_s6 }
  0x36   : > { %p1015_p12 = pnand %p1013_p11, %p984_p3 }
  0x37   : > { %p1020_p5 = por %p1019_p4, %p1018_p2 }
  0x38   : > { %p1016_p10 = pneg %p1015_p12 }
  0x39   : > { %p1022_p9 = por %p1021_p8, %p1020_p5 }
  0x3b   : > { %p1023_p0 = pnand %p1022_p9, %p1016_p10 }
  0x3d   : > { %1026 = shalt.err (!%p1023_p0)
}
  0x3e   : > { %s1027_s23 = scalar_lea.vmem %s146_s8, 16  ;;  %s1115_s24 = smov [#allocation5]  }
  0x3f   : > { %p1028_p1 = scmp.ne.s32.totalorder %s146_s8, %s1027_s23  ;;  %s1032_s25 = sshll.u32 %s1115_s24, 4  ;;  %s1033_s25 = int_to_ptr.vmem [resolvable:$false] %s1032_s25 }
  0x40   : > { %s1034_s27 = scalar_lea.vmem %s1033_s25, 32  ;;  %p1035_p6 = scmp.lt.s32.totalorder %s146_s8, %s1033_s25 }
  0x41   : > { %p1030_p11 = pnand %p1028_p1, %p984_p3  ;;  %p1036_p7 = scmp.lt.s32.totalorder %s1034_s27, %s1027_s23 }
  0x43   : > { %p1031_p12 = pneg %p1030_p11  ;;  %p1037_p2 = por %p1036_p7, %p1035_p6 }
  0x45   : > { %p1038_p4 = pnand %p1037_p2, %p1031_p12 }
  0x47   : > { %1041 = shalt.err (!%p1038_p4)
}
  0x48   : > { %907 = dma.hbm_to_vmem [thread:$0]  (!%p1218_p13), %s1264_s6, 16, %s146_s8, %s136_s28  }
  0x49   : > { %p1451_p10 = scmp.ne.s32.totalorder %s1450_s26, 0 }
  0x4a   : > { %s1290_s29 = sand.u32 (!%p1451_p10), 1, %s1104_s10   ;;  %p1452_p6 = scmp.ne.s32.totalorder (!%p1451_p10), %s1444_s20, 0 }
  0x4b   : > { %154 = sbr.rel (%p1451_p10) target bundleno = 1687 (0x697), region = 28  ;;  %s806_s5 = sshll.u32 (!%p1451_p10), %s1290_s29, 2 }
  0x4c   : > { %s157_s7 = scalar_lea.sflag (!%p1451_p10), [#allocation3], %s1290_s29  ;;  %s1296_s30 = scalar_lea.vmem (!%p1451_p10), [#allocation2], %s806_s5 }
  0x52   : > { %1087 = dma.done.wait (%p1452_p6), %s157_s7, 64  }
  0x53   : > { %1089 = vsyncadd (%p1452_p6), %s157_s7, 4294967232  ;;  %s166_s3 = scalar_lea.sflag [#allocation6], %s1290_s29  ;;  %s168_s26 = scalar_lea.vmem [#allocation5], %s1290_s29 }
  0x54   : > { %1091 = dma.done.wait (%p1452_p6), %s166_s3, 16  }
  0x55   : > { %1093 = vsyncadd (%p1452_p6), %s166_s3, 4294967280  ;;  %v1116_v0 = vmov 0.0   ;;  %vm1117_vm0 = vmmov 0   ;;  %v195_v1 = vld [vmem:[%s1296_s30] sm:$0xf]  ;;  %s1118_s6 = smov 96  }
  0x56   : > { %847 = vmatprep.subr.bf16.mxu0 %v1116_v0  ;;  %849 = vmatprep.mubr.msk.bf16.mxu0 %vm1117_vm0, %v1116_v0  ;;  %v808_v2 = vcombine.low %v195_v1, %v195_v1  ;;  %vm201_vm1 = vcmask 64512   ;;  %s1119_s20 = smov 64   ;;  %v1321_v5 = vld [vmem:[%s1296_s30] ss:$0 sps:$4 sm:$0xff]   ;;  %s1120_s8 = smov 88   ;;  %vm273_vm2 = vcmask 1043456  }
  0x57   : > { %853 = vmatprep.subr.bf16.mxu1 %v1116_v0  ;;  %855 = vmatprep.mubr.msk.bf16.mxu1 %vm1117_vm0, %v1116_v0  ;;  %v1324_v7 = vld [vmem:[%s168_s26] ss:$0 sm:$0xff]  ;;  %s1121_s28 = smov 72   ;;  %s1122_s4 = smov 120   ;;  %vm318_vm3 = vcmask 60416   ;;  %vm443_vm4 = vcmask 126016  }
  0x58   : > { %199 = vrot.lane.b32.xlu0 %v808_v2, %s1118_s6  ;;  %268 = vrot.lane.b32.xlu1 %v808_v2, %s1119_s20  ;;  %v1329_v14 = vld [vmem:[%s1296_s30] ss:$0 sps:$4 sm:$0xff]   ;;  %s1123_s14 = smov 80   ;;  %s1124_s16 = smov 112   ;;  %vm568_vm5 = vcmask 191616   ;;  %vm693_vm6 = vcmask 257216  }
  0x59   : > { %v1337_v22 = vld [vmem:[%s1296_s30] ss:$0 sps:$4 sm:$0xff]   ;;  %s1125_s17 = smov 104   ;;  %s1359_s19 = scalar_lea.vmem [#allocation7], %s806_s5 }
  0x5a   : > { %s1126_s23 = smov 56   ;;  %s1127_s24 = smov 48  }
  0x5b   : > { %s1128_s25 = smov 40   ;;  %s1129_s27 = smov 8  }
  0x5c   : > { %326 = vrot.lane.b32.xlu1 %v1321_v5, %s1120_s8  ;;  %s1130_s5 = smov 16   ;;  %s1131_s7 = smov 24  }
  0x5d   : > { %s825_s30 = sshll.u32 %s1169_s13, 6  ;;  %s709_s3 = sshll.u32 %s1359_s19, 4  ;;  %s1395_s3 = int_to_ptr.vmem [resolvable:$true] %s709_s3 }
  0x5e   : > { %s1393_s20 = scalar_lea.hbm %s1440_s2, %s825_s30  ;;  %s696_s8 = scalar_lea.sflag [#allocation4], %s1290_s29 }
  0x5f   : > { %p1453_p3 = scmp.ne.s32.totalorder %s1445_s21, 0  ;;  %s1132_s13 = smov [#allocation7]  }
  0xca   : > { %v200_v3 = vpop.permute.xlu0 %199  ;;  %v269_v15 = vpop.permute.xlu1 %268 }
  0xcb   : > { %v206_v4 = vsel %vm201_vm1, %v200_v3, 0  ;;  %v275_v16 = vsel %vm273_vm2, %v269_v15, 0 }
  0xcc   : > { %848 = vmatpush3.bf16.xpose.msra.mxu0 %v206_v4  ;;  %854 = vmatpush3.bf16.msra.mxu1 %v275_v16 }
  0xcd   : > { %865 = vmatprep.subr.bf16.mxu0 %v1116_v0  ;;  %859 = vmatprep.subr.bf16.mxu1 %v1116_v0 }
  0xce   : > { %v327_v23 = vpop.permute.xlu1 %326 }
  0xcf   : > { %v332_v29 = vsel %vm201_vm1, %v327_v23, 0 }
  0xd3   : > { %850 = vmatmul.mubr.msk.bf16.vlgmr.msra.gmra.mrb[0].mxu0 %vm201_vm1, %v195_v1 }
  0xd4   : > { %867 = vmatprep.mubr.msk.bf16.mxu0 %vm1117_vm0, %v1116_v0 }
 0x1a6   : > { %v242_v6 = vpop.f32.mrb[0].mxu0 }
 0x1a7   : > { %v248_v8 = vmul.f32 0.35355338, %v242_v6  ;;  %v851_v9 = vpop.f32.mrb[1].mxu0 }
 0x1a8   : > { %v245_v10 = vpop.f32.mrb[2].mxu0 }
 0x1a9   : > { %v852_v11 = vpop.f32.mrb[3].mxu0  ;;  %v255_v12 = vadd.f32 %v1324_v7, %v248_v8 }
 0x1ab   : > { %v256_v13 = vsel %vm201_vm1, %v255_v12, -inf }
 0x1ac   : > { %257 = vmax.xlane.f32.xlu0 %v256_v13 }
 0x1c2   : > { %576 = vrot.lane.b32.xlu0 %v1329_v14, %s1121_s28  ;;  %s1042_s28 = scalar_lea.vmem %s1395_s3, 64 }
 0x1c3   : > { %p1043_p13 = scmp.ne.s32.totalorder %s1395_s3, %s1042_s28 }
 0x1c5   : > { %p1044_p7 = pnand %p1043_p13, %p1453_p3 }
 0x1c7   : > { %p1045_p5 = pneg %p1044_p7 }
 0x239   : > { %v258_v17 = vpop.xlane.xlu0 %257 }
 0x23a   : > { %v259_v18 = vsub.f32 %v255_v12, %v258_v17 }
 0x23c   : > { %v260_v19 = vmul.f32 1.442695, %v259_v18 }
 0x23d   : > { %v577_v32 = vpop.permute.xlu0 %576 }
 0x23e   : > { %966 = vpow2.f32 %v260_v19  ;;  %v582_v34 = vsel %vm201_vm1, %v577_v32, 0 }
 0x248   : > { %v967_v20 = vpop.eup %966 }
 0x249   : > { %v262_v21 = vsel %vm201_vm1, %v967_v20, 0.0 }
 0x24a   : > { %263 = vadd.xlane.f32.xlu1 %v262_v21 }
 0x25b   : > { %324 = vrot.lane.b32.xlu1 %v1321_v5, %s1122_s4  ;;  %s1046_s4 = sshll.u32 %s1132_s13, 4  ;;  %s1047_s4 = int_to_ptr.vmem [resolvable:$false] %s1046_s4 }
 0x25c   : > { %p1049_p8 = scmp.lt.s32.totalorder %s1395_s3, %s1047_s4 }
 0x25f   : > { %451 = vrot.lane.b32.xlu1 %v1337_v22, %s1123_s14  ;;  %s1048_s14 = scalar_lea.vmem %s1047_s4, 128 }
 0x260   : > { %p1050_p9 = scmp.lt.s32.totalorder %s1048_s14, %s1042_s28 }
 0x262   : > { %p1051_p0 = por %p1050_p9, %p1049_p8 }
 0x263   : > { %449 = vrot.lane.b32.xlu1 %v1337_v22, %s1124_s16 }
 0x264   : > { %p1052_p1 = pnand %p1051_p0, %p1045_p5 }
 0x267   : > { %574 = vrot.lane.b32.xlu1 %v1329_v14, %s1125_s17 }
 0x2d7   : > { %v264_v24 = vpop.xlane.xlu1 %263 }
 0x2d8   : > { %968 = vrcp.f32 %v264_v24 }
 0x2db   : > { %v325_v27 = vpop.permute.xlu1 %324 }
 0x2df   : > { %v452_v30 = vpop.permute.xlu1 %451 }
 0x2e0   : > { %v457_v31 = vsel %vm201_vm1, %v452_v30, 0 }
 0x2e2   : > { %v969_v25 = vpop.eup %968 }
 0x2e3   : > { %v266_v26 = vmul.f32 %v969_v25, %v967_v20  ;;  %v450_v33 = vpop.permute.xlu1 %449 }
 0x2e5   : > { %v267_v28 = vpack.c.bf16 %v266_v26, %v266_v26 }
 0x2e7   : > { %856 = vmatmul.mubr.msk.bf16.vlgmr.msra.gmra.mrb[0].mxu1 %vm201_vm1, %v267_v28  ;;  %v575_v35 = vpop.permute.xlu1 %574 }
 0x2e8   : > { %860 = vmatpush3.bf16.xpose.msra.mxu1 %v332_v29  ;;  %861 = vmatprep.mubr.msk.bf16.mxu1 %vm1117_vm0, %v1116_v0 }
 0x2e9   : > { %871 = vmatprep.subr.bf16.mxu1 %v1116_v0 }
 0x2ef   : > { %862 = vmatmul.mubr.msk.bf16.vlgmr.msra.gmra.mrb[4].mxu1 %vm201_vm1, %v325_v27 }
 0x2f0   : > { %872 = vmatpush3.bf16.xpose.msra.mxu1 %v457_v31  ;;  %873 = vmatprep.mubr.msk.bf16.mxu1 %vm1117_vm0, %v1116_v0 }
 0x2f1   : > { %883 = vmatprep.subr.bf16.mxu1 %v1116_v0 }
 0x2f7   : > { %874 = vmatmul.mubr.msk.bf16.vlgmr.msra.gmra.mrb[8].mxu1 %vm201_vm1, %v450_v33 }
 0x2f8   : > { %884 = vmatpush3.bf16.xpose.msra.mxu1 %v582_v34  ;;  %885 = vmatprep.mubr.msk.bf16.mxu1 %vm1117_vm0, %v1116_v0 }
 0x2ff   : > { %886 = vmatmul.mubr.msk.bf16.vlgmr.msra.gmra.mrb[12].mxu1 %vm201_vm1, %v575_v35 }
 0x3ba   : > { %v311_v36 = vpop.f32.mrb[0].mxu1 }
 0x3bb   : > { %v317_v37 = vpack.c.bf16 %v311_v36, %v311_v36  ;;  %v857_v38 = vpop.f32.mrb[1].mxu1 }
 0x3bc   : > { %v314_v39 = vpop.f32.mrb[2].mxu1 }
 0x3bd   : > { %319 = vst.msk [vmem:[%s1359_s19] sm:$0xf] %vm318_vm3, %v317_v37  ;;  %v858_v40 = vpop.f32.mrb[3].mxu1 }
 0x3c2   : > { %v368_v41 = vpop.f32.mrb[4].mxu1 }
 0x3c3   : > { %v374_v42 = vmul.f32 0.35355338, %v368_v41  ;;  %v863_v43 = vpop.f32.mrb[5].mxu1 }
 0x3c4   : > { %v371_v44 = vpop.f32.mrb[6].mxu1 }
 0x3c5   : > { %v864_v45 = vpop.f32.mrb[7].mxu1  ;;  %v375_v46 = vadd.f32 %v1324_v7, %v374_v42 }
 0x3c7   : > { %v376_v47 = vsel %vm201_vm1, %v375_v46, -inf }
 0x3c8   : > { %377 = vmax.xlane.f32.xlu1 %v376_v47 }
 0x3ca   : > { %v493_v48 = vpop.f32.mrb[8].mxu1 }
 0x3cb   : > { %v499_v49 = vmul.f32 0.35355338, %v493_v48  ;;  %v875_v50 = vpop.f32.mrb[9].mxu1 }
 0x3cc   : > { %v496_v51 = vpop.f32.mrb[10].mxu1 }
 0x3cd   : > { %v500_v52 = vadd.f32 %v1324_v7, %v499_v49  ;;  %v876_v53 = vpop.f32.mrb[11].mxu1 }
 0x3cf   : > { %v501_v54 = vsel %vm201_vm1, %v500_v52, -inf }
 0x3d0   : > { %502 = vmax.xlane.f32.xlu0 %v501_v54 }
 0x3d2   : > { %v618_v55 = vpop.f32.mrb[12].mxu1 }
 0x3d3   : > { %v624_v56 = vmul.f32 0.35355338, %v618_v55  ;;  %v887_v57 = vpop.f32.mrb[13].mxu1 }
 0x3d4   : > { %v621_v58 = vpop.f32.mrb[14].mxu1 }
 0x3d5   : > { %v625_v59 = vadd.f32 %v1324_v7, %v624_v56  ;;  %v888_v60 = vpop.f32.mrb[15].mxu1 }
 0x3d7   : > { %v626_v61 = vsel %vm201_vm1, %v625_v59, -inf }
 0x3d8   : > { %627 = vmax.xlane.f32.xlu1 %v626_v61 }
 0x455   : > { %v378_v62 = vpop.xlane.xlu1 %377 }
 0x456   : > { %v379_v63 = vsub.f32 %v375_v46, %v378_v62 }
 0x458   : > { %v380_v1 = vmul.f32 1.442695, %v379_v63 }
 0x45a   : > { %970 = vpow2.f32 %v380_v1 }
 0x45d   : > { %v503_v7 = vpop.xlane.xlu0 %502 }
 0x45e   : > { %v504_v11 = vsub.f32 %v500_v52, %v503_v7 }
 0x460   : > { %v505_v12 = vmul.f32 1.442695, %v504_v11 }
 0x464   : > { %v971_v2 = vpop.eup %970 }
 0x465   : > { %v628_v3 = vpop.xlane.xlu1 %627  ;;  %v382_v4 = vsel %vm201_vm1, %v971_v2, 0.0 }
 0x466   : > { %v629_v6 = vsub.f32 %v625_v59, %v628_v3  ;;  %383 = vadd.xlane.f32.xlu1 %v382_v4 }
 0x468   : > { %v630_v8 = vmul.f32 1.442695, %v629_v6 }
 0x46a   : > { %972 = vpow2.f32 %v630_v8 }
 0x46b   : > { %974 = vpow2.f32 %v505_v12 }
 0x474   : > { %v973_v9 = vpop.eup %972 }
 0x475   : > { %v632_v10 = vsel %vm201_vm1, %v973_v9, 0.0  ;;  %v975_v13 = vpop.eup %974 }
 0x476   : > { %633 = vadd.xlane.f32.xlu0 %v632_v10  ;;  %v507_v15 = vsel %vm201_vm1, %v975_v13, 0.0 }
 0x477   : > { %388 = vrot.lane.b32.xlu1 %v1321_v5, %s1126_s23 }
 0x48c   : > { %513 = vrot.lane.b32.xlu0 %v1337_v22, %s1127_s24 }
 0x49b   : > { %508 = vadd.xlane.f32.xlu1 %v507_v15 }
 0x4ac   : > { %638 = vrot.lane.b32.xlu1 %v1329_v14, %s1128_s25 }
 0x4f3   : > { %v384_v16 = vpop.xlane.xlu1 %383 }
 0x4f4   : > { %976 = vrcp.f32 %v384_v16 }
 0x4f7   : > { %v389_v17 = vpop.permute.xlu1 %388 }
 0x4f8   : > { %v394_v18 = vsel %vm273_vm2, %v389_v17, 0 }
 0x4f9   : > { %866 = vmatpush3.bf16.msra.mxu0 %v394_v18 }
 0x4fa   : > { %877 = vmatprep.subr.bf16.mxu0 %v1116_v0 }
 0x4fe   : > { %v977_v5 = vpop.eup %976 }
 0x4ff   : > { %v386_v19 = vmul.f32 %v977_v5, %v971_v2 }
 0x501   : > { %v387_v20 = vpack.c.bf16 %v386_v19, %v386_v19 }
 0x503   : > { %868 = vmatmul.mubr.msk.bf16.vlgmr.msra.gmra.mrb[4].mxu0 %vm201_vm1, %v387_v20  ;;  %v634_v21 = vpop.xlane.xlu0 %633 }
 0x504   : > { %879 = vmatprep.mubr.msk.bf16.mxu0 %vm1117_vm0, %v1116_v0 }
 0x507   : > { %v514_v22 = vpop.permute.xlu0 %513 }
 0x508   : > { %v519_v14 = vsel %vm273_vm2, %v514_v22, 0 }
 0x509   : > { %878 = vmatpush3.bf16.msra.mxu0 %v519_v14 }
 0x50a   : > { %889 = vmatprep.subr.bf16.mxu0 %v1116_v0 }
 0x528   : > { %v509_v23 = vpop.xlane.xlu1 %508 }
 0x529   : > { %978 = vrcp.f32 %v509_v23 }
 0x52a   : > { %980 = vrcp.f32 %v634_v21 }
 0x52c   : > { %v639_v25 = vpop.permute.xlu1 %638 }
 0x52d   : > { %v644_v27 = vsel %vm273_vm2, %v639_v25, 0 }
 0x533   : > { %v979_v24 = vpop.eup %978 }
 0x534   : > { %v511_v26 = vmul.f32 %v979_v24, %v975_v13  ;;  %v981_v29 = vpop.eup %980 }
 0x535   : > { %v636_v30 = vmul.f32 %v981_v29, %v973_v9 }
 0x536   : > { %v512_v28 = vpack.c.bf16 %v511_v26, %v511_v26 }
 0x537   : > { %v637_v31 = vpack.c.bf16 %v636_v30, %v636_v30 }
 0x538   : > { %880 = vmatmul.mubr.msk.bf16.vlgmr.msra.gmra.mrb[8].mxu0 %vm201_vm1, %v512_v28 }
 0x539   : > { %890 = vmatpush3.bf16.msra.mxu0 %v644_v27  ;;  %891 = vmatprep.mubr.msk.bf16.mxu0 %vm1117_vm0, %v1116_v0 }
 0x540   : > { %892 = vmatmul.mubr.msk.bf16.vlgmr.msra.gmra.mrb[12].mxu0 %vm201_vm1, %v637_v31 }
 0x5d6   : > { %v430_v32 = vpop.f32.mrb[4].mxu0 }
 0x5d7   : > { %v828_v33 = vpack.c.bf16 %v430_v32, %v430_v32  ;;  %v869_v34 = vpop.f32.mrb[5].mxu0 }
 0x5d8   : > { %v433_v35 = vpop.f32.mrb[6].mxu0 }
 0x5d9   : > { %v870_v36 = vpop.f32.mrb[7].mxu0  ;;  %440 = vrot.lane.b32.xlu1 %v828_v33, %s1129_s27 }
 0x60b   : > { %v555_v37 = vpop.f32.mrb[8].mxu0 }
 0x60c   : > { %v829_v38 = vpack.c.bf16 %v555_v37, %v555_v37  ;;  %v881_v39 = vpop.f32.mrb[9].mxu0 }
 0x60d   : > { %v558_v40 = vpop.f32.mrb[10].mxu0 }
 0x60e   : > { %565 = vrot.lane.b32.xlu0 %v829_v38, %s1130_s5  ;;  %v882_v0 = vpop.f32.mrb[11].mxu0 }
 0x613   : > { %v680_v41 = vpop.f32.mrb[12].mxu0 }
 0x614   : > { %v830_v42 = vpack.c.bf16 %v680_v41, %v680_v41  ;;  %v893_v43 = vpop.f32.mrb[13].mxu0 }
 0x615   : > { %v683_v44 = vpop.f32.mrb[14].mxu0 }
 0x616   : > { %690 = vrot.lane.b32.xlu1 %v830_v42, %s1131_s7  ;;  %v894_v45 = vpop.f32.mrb[15].mxu0 }
 0x64b   : > { %v441_v46 = vpop.permute.xlu1 %440 }
 0x64c   : > { %444 = vst.msk [vmem:[%s1359_s19] sm:$0xf] %vm443_vm4, %v441_v46 }
 0x680   : > { %v566_v47 = vpop.permute.xlu0 %565 }
 0x681   : > { %569 = vst.msk [vmem:[%s1359_s19] sm:$0xf] %vm568_vm5, %v566_v47 }
 0x688   : > { %v691_v48 = vpop.permute.xlu1 %690 }
 0x689   : > { %694 = vst.msk [vmem:[%s1359_s19] sm:$0xf] %vm693_vm6, %v691_v48 }
 0x68a   : > { %1055 = shalt.err (!%p1052_p1)
}
 0x68b   : > { %s1056_s29 = scalar_lea.hbm %s1393_s20, 64  ;;  %s1060_s19 = scalar_lea.hbm %s1440_s2, 128 }
 0x68c   : > { %p1057_p11 = scmp.ne.s32.totalorder %s1393_s20, %s1056_s29  ;;  %p1061_p4 = scmp.lt.u32.totalorder %s1393_s20, %s1440_s2 }
 0x68d   : > { %p1062_p10 = scmp.lt.u32.totalorder %s1060_s19, %s1056_s29  ;;  %p1064_p13 = scmp.lt.u32.totalorder %s1056_s29, %s1393_s20 }
 0x68e   : > { %p1058_p12 = pnand %p1057_p11, %p1453_p3 }
 0x68f   : > { %p1063_p6 = por %p1062_p10, %p1061_p4 }
 0x690   : > { %p1059_p2 = pneg %p1058_p12 }
 0x691   : > { %p1065_p7 = por %p1064_p13, %p1063_p6 }
 0x693   : > { %p1066_p5 = pnand %p1065_p7, %p1059_p2 }
 0x695   : > { %1069 = shalt.err (!%p1066_p5)
}
 0x696   : > { %899 = dma.vmem_to_hbm [thread:$0]  (%p1453_p3), %s1395_s3, 64, %s1393_s20, %s696_s8  }
 0x697 PF: > { %s721_s25 = sand.u32 1, %s1100_s9   ;;  %p1454_p8 = scmp.ne.s32.totalorder %s1446_s22, 0 }
 0x698   : > { %p1455_p9 = scmp.ge.s32.totalorder %s1112_s12, 2  ;;  %s722_s27 = scalar_lea.sflag [#allocation4], %s721_s25 }
 0x69a   : > { %p909_p0 = pnand %p1455_p9, %p1454_p8 }
 0x69c   : > { %1095 = dma.done.wait (!%p909_p0), %s722_s27, 64  }
 0x69d   : > { %1097 = vsyncadd (!%p909_p0), %s722_s27, 4294967232  ;;  %p18_p1 = scmp.ge.s32.totalorder %s1173_s15, 4   ;;  %s1456_s9 = smov %s1104_s10 }
 0x69e   : > { %s1457_s10 = smov %s1108_s11  ;;  %s1458_s11 = smov %s1185_s18 }
 0x69f   : > { %s1459_s12 = smov %s1173_s15  ;;  %20 = sbr.rel (!%p18_p1) target bundleno = 7 (0x7), region = 86 }
 0x6a6   :  { %727 = vsyncpa [#allocation3], 1 }
 0x6a7   :  { %729 = vsyncpa [#allocation3 + $0x1], 1 }
 0x6a8   :  { %730 = vsyncpa [#allocation6], 1 }
 0x6a9   :  { %732 = vsyncpa [#allocation6 + $0x1], 1 }
 0x6aa   :  { %733 = vsyncpa [#allocation4], 1 }
 0x6ab   :  { %735 = vsyncpa [#allocation4 + $0x1], 1 }

// kernel: roberta_forward.14
= control target key start
LH: loop header
LB: loop body
LE: loop exit
PB: predicated region body
PF: predicated region fallthrough
CT: control target
= control target key end

     0   :  { %12 = vsyncpa [#allocation4], 0  ;;  %s840_s0 = inlined_call_operand.hbm [shape: bf16[16,32], index: 0, kind: input, shape index: {}]   ;;  %s841_s1 = inlined_call_operand.hbm [shape: bf16[32,64], index: 1, kind: input, shape index: {}]   ;;  %s842_s2 = inlined_call_operand.hbm [shape: f32[1,64], index: 2, kind: input, shape index: {}]   ;;  %s843_s3 = inlined_call_operand.hbm [shape: bf16[64,32], index: 3, kind: input, shape index: {}]   ;;  %s844_s4 = inlined_call_operand.hbm [shape: f32[1,32], index: 4, kind: input, shape index: {}]   ;;  %s845_s5 = inlined_call_operand.hbm [shape: f32[1,32], index: 5, kind: input, shape index: {}]   ;;  %s846_s6 = inlined_call_operand.hbm [shape: f32[1,32], index: 6, kind: input, shape index: {}]   ;;  %s847_s7 = inlined_call_operand.hbm [shape: bf16[16,32], index: 7, kind: output, shape index: {}]  }
   0x1   :  { %13 = vsyncpa [#allocation7], 0 }
   0x2   :  { %14 = vsyncpa [#allocation10], 0 }
   0x3   :  { %15 = vsyncpa [#allocation13], 0 }
   0x4   :  { %16 = vsyncpa [#allocation5], 0  ;;  %s657_s24 = smov [#allocation6]   ;;  %s658_s26 = smov [#allocation9]  }
   0x5   :  { %s34_s25 = sshll.u32 %s657_s24, 4  ;;  %s56_s27 = sshll.u32 %s658_s26, 4  ;;  %s35_s25 = int_to_ptr.vmem [resolvable:$true] %s34_s25  ;;  %s709_s27 = int_to_ptr.vmem [resolvable:$true] %s56_s27 }
   0x6   :  { %s471_s30 = scalar_lea.hbm %s841_s1, 256 }
   0x7   :  { %p472_p0 = scmp.ne.s32.totalorder %s841_s1, %s471_s30  ;;  %p475_p1 = scmp.lt.u32.totalorder %s471_s30, %s841_s1 }
   0x9   :  { %p477_p2 = pnand %p475_p1, %p472_p0 }
   0xb   :  { %480 = shalt.err (!%p477_p2)
}
   0xc   :  { %s481_s12 = scalar_lea.vmem %s35_s25, 256  ;;  %p486_p4 = scmp.lt.s32.totalorder %s35_s25, %s35_s25 }
   0xd   :  { %p482_p3 = scmp.ne.s32.totalorder %s35_s25, %s481_s12  ;;  %p487_p5 = scmp.lt.s32.totalorder %s481_s12, %s481_s12 }
   0xf   :  { %p488_p6 = por %p487_p5, %p486_p4 }
  0x11   :  { %p489_p7 = pnand %p488_p6, %p482_p3 }
  0x13   :  { %492 = shalt.err (!%p489_p7)
}
  0x14   :  { %s659_s13 = smov 64   ;;  %s660_s14 = smov 4  }
  0x15   :  { %40 = dma.hbm_to_vmem [thread:$0]  %s841_s1, 256, %s35_s25, [#allocation7], %s659_s13, %s659_s13, %s660_s14  }
  0x16   :  { %s493_s19 = scalar_lea.hbm %s843_s3, 512 }
  0x17   :  { %p494_p8 = scmp.ne.s32.totalorder %s843_s3, %s493_s19  ;;  %p497_p9 = scmp.lt.u32.totalorder %s493_s19, %s843_s3 }
  0x19   :  { %p499_p10 = pnand %p497_p9, %p494_p8 }
  0x1b   :  { %502 = shalt.err (!%p499_p10)
}
  0x1c   :  { %s503_s24 = scalar_lea.vmem %s709_s27, 512  ;;  %p508_p12 = scmp.lt.s32.totalorder %s709_s27, %s709_s27 }
  0x1d   :  { %p504_p11 = scmp.ne.s32.totalorder %s709_s27, %s503_s24  ;;  %p509_p13 = scmp.lt.s32.totalorder %s503_s24, %s503_s24 }
  0x1f   :  { %p510_p0 = por %p509_p13, %p508_p12 }
  0x21   :  { %p511_p1 = pnand %p510_p0, %p504_p11 }
  0x23   :  { %514 = shalt.err (!%p511_p1)
}
  0x24   :  { %62 = dma.hbm_to_vmem [thread:$0]  %s843_s3, 512, %s709_s27, [#allocation10], %s659_s13, %s659_s13, %s660_s14  }
  0x25   :  { %s661_s26 = smov [#allocation12]   ;;  %s662_s29 = smov [#allocation3]  }
  0x26   :  { %s79_s28 = sshll.u32 %s661_s26, 4  ;;  %s22_s30 = sshll.u32 %s662_s29, 4  ;;  %s80_s28 = int_to_ptr.vmem [resolvable:$true] %s79_s28  ;;  %s746_s30 = int_to_ptr.vmem [resolvable:$true] %s22_s30 }
  0x27   :  { %s515_s10 = scalar_lea.hbm %s845_s5, 16 }
  0x28   :  { %p516_p2 = scmp.ne.s32.totalorder %s845_s5, %s515_s10  ;;  %p519_p3 = scmp.lt.u32.totalorder %s515_s10, %s845_s5 }
  0x2a   :  { %p521_p4 = pnand %p519_p3, %p516_p2 }
  0x2c   :  { %524 = shalt.err (!%p521_p4)
}
  0x2d   :  { %s525_s3 = scalar_lea.vmem %s80_s28, 16  ;;  %s529_s27 = scalar_lea.vmem %s80_s28, 32 }
  0x2e   :  { %p526_p5 = scmp.ne.s32.totalorder %s80_s28, %s525_s3  ;;  %p530_p6 = scmp.lt.s32.totalorder %s80_s28, %s80_s28 }
  0x2f   :  { %p531_p7 = scmp.lt.s32.totalorder %s529_s27, %s525_s3 }
  0x31   :  { %p532_p8 = por %p531_p7, %p530_p6 }
  0x33   :  { %p533_p9 = pnand %p532_p8, %p526_p5 }
  0x35   :  { %536 = shalt.err (!%p533_p9)
}
  0x36   :  { %82 = dma.hbm_to_vmem [thread:$0]  %s845_s5, 16, %s80_s28, [#allocation13]  }
  0x37   :  { %s537_s21 = scalar_lea.hbm %s840_s0, 128 }
  0x38   :  { %p538_p10 = scmp.ne.s32.totalorder %s840_s0, %s537_s21  ;;  %p541_p11 = scmp.lt.u32.totalorder %s537_s21, %s840_s0 }
  0x3a   :  { %p543_p12 = pnand %p541_p11, %p538_p10 }
  0x3c   :  { %546 = shalt.err (!%p543_p12)
}
  0x3d   :  { %s547_s25 = scalar_lea.vmem %s746_s30, 128  ;;  %p552_p0 = scmp.lt.s32.totalorder %s746_s30, %s746_s30 }
  0x3e   :  { %p548_p13 = scmp.ne.s32.totalorder %s746_s30, %s547_s25  ;;  %p553_p1 = scmp.lt.s32.totalorder %s547_s25, %s547_s25 }
  0x40   :  { %p554_p2 = por %p553_p1, %p552_p0 }
  0x42   :  { %p555_p3 = pnand %p554_p2, %p548_p13 }
  0x44   :  { %558 = shalt.err (!%p555_p3)
}
  0x45   :  { %28 = dma.hbm_to_vmem [thread:$0]  %s840_s0, 128, %s746_s30, [#allocation4], %s659_s13, %s659_s13, %s660_s14  }
  0x46   :  { %s663_s28 = smov [#allocation8]   ;;  %s664_s8 = smov [#allocation11]  }
  0x47   :  { %s47_s29 = sshll.u32 %s663_s28, 4  ;;  %s69_s9 = sshll.u32 %s664_s8, 4  ;;  %s48_s29 = int_to_ptr.vmem [resolvable:$true] %s47_s29  ;;  %s70_s9 = int_to_ptr.vmem [resolvable:$true] %s69_s9 }
  0x48   :  { %s559_s12 = scalar_lea.hbm %s842_s2, 16 }
  0x49   :  { %p560_p4 = scmp.ne.s32.totalorder %s842_s2, %s559_s12  ;;  %p563_p5 = scmp.lt.u32.totalorder %s559_s12, %s842_s2 }
  0x4b   :  { %p565_p6 = pnand %p563_p5, %p560_p4 }
  0x4d   :  { %568 = shalt.err (!%p565_p6)
}
  0x4e   :  { %s569_s0 = scalar_lea.vmem %s48_s29, 16  ;;  %s573_s30 = scalar_lea.vmem %s48_s29, 32 }
  0x4f   :  { %p570_p7 = scmp.ne.s32.totalorder %s48_s29, %s569_s0  ;;  %p574_p8 = scmp.lt.s32.totalorder %s48_s29, %s48_s29 }
  0x50   :  { %p575_p9 = scmp.lt.s32.totalorder %s573_s30, %s569_s0 }
  0x52   :  { %p576_p10 = por %p575_p9, %p574_p8 }
  0x54   :  { %p577_p11 = pnand %p576_p10, %p570_p7 }
  0x56   :  { %580 = shalt.err (!%p577_p11)
}
  0x57   :  { %50 = dma.hbm_to_vmem [thread:$0]  %s842_s2, 16, %s48_s29, [#allocation7]  }
  0x58   :  { %s581_s21 = scalar_lea.hbm %s844_s4, 16 }
  0x59   :  { %p582_p12 = scmp.ne.s32.totalorder %s844_s4, %s581_s21  ;;  %p585_p13 = scmp.lt.u32.totalorder %s581_s21, %s844_s4 }
  0x5b   :  { %p587_p0 = pnand %p585_p13, %p582_p12 }
  0x5d   :  { %590 = shalt.err (!%p587_p0)
}
  0x5e   :  { %s591_s25 = scalar_lea.vmem %s70_s9, 16  ;;  %s595_s5 = scalar_lea.vmem %s70_s9, 32 }
  0x5f   :  { %p592_p1 = scmp.ne.s32.totalorder %s70_s9, %s591_s25  ;;  %p596_p2 = scmp.lt.s32.totalorder %s70_s9, %s70_s9 }
  0x60   :  { %p597_p3 = scmp.lt.s32.totalorder %s595_s5, %s591_s25 }
  0x62   :  { %p598_p4 = por %p597_p3, %p596_p2 }
  0x64   :  { %p599_p5 = pnand %p598_p4, %p592_p1 }
  0x66   :  { %602 = shalt.err (!%p599_p5)
}
  0x67   :  { %72 = dma.hbm_to_vmem [thread:$0]  %s844_s4, 16, %s70_s9, [#allocation10]  }
  0x68   :  { %s665_s28 = smov [#allocation14]   ;;  %s603_s11 = scalar_lea.hbm %s846_s6, 16 }
  0x69   :  { %s89_s29 = sshll.u32 %s665_s28, 4  ;;  %p604_p6 = scmp.ne.s32.totalorder %s846_s6, %s603_s11  ;;  %s90_s29 = int_to_ptr.vmem [resolvable:$true] %s89_s29 }
  0x6a   :  { %p607_p7 = scmp.lt.u32.totalorder %s603_s11, %s846_s6 }
  0x6c   :  { %p609_p8 = pnand %p607_p7, %p604_p6 }
  0x6e   :  { %612 = shalt.err (!%p609_p8)
}
  0x6f   :  { %s613_s27 = scalar_lea.vmem %s90_s29, 16  ;;  %s617_s4 = scalar_lea.vmem %s90_s29, 32 }
  0x70   :  { %p614_p9 = scmp.ne.s32.totalorder %s90_s29, %s613_s27  ;;  %p618_p10 = scmp.lt.s32.totalorder %s90_s29, %s90_s29 }
  0x71   :  { %p619_p11 = scmp.lt.s32.totalorder %s617_s4, %s613_s27 }
  0x73   :  { %p620_p12 = por %p619_p11, %p618_p10 }
  0x75   :  { %p621_p13 = pnand %p620_p12, %p614_p9 }
  0x77   :  { %624 = shalt.err (!%p621_p13)
}
  0x78   :  { %92 = dma.hbm_to_vmem [thread:$0]  %s846_s6, 16, %s90_s29, [#allocation13]  }
  0x79   :  { %647 = dma.done.wait [#allocation4], 128  }
  0x7a   :  { %648 = vsyncadd [#allocation4], 4294967168 }
  0x7b   :  { %649 = dma.done.wait [#allocation7], 272  }
  0x7c   :  { %650 = vsyncadd [#allocation7], 4294967024 }
  0x7d   :  { %651 = dma.done.wait [#allocation10], 528  }
  0x7e   :  { %652 = vsyncadd [#allocation10], 4294966768 }
  0x7f   :  { %653 = dma.done.wait [#allocation13], 32  }
  0x80   :  { %654 = vsyncadd [#allocation13], 4294967264  ;;  %vm119_vm0 = vcmask 261120   ;;  %v666_v0 = vmov 0.0   ;;  %vm667_vm1 = vmmov 0   ;;  %v456_v1 = vld [vmem:[#allocation6] sm:$0xff]  }
  0x81   :  { %424 = vmatprep.subr.bf16.mxu0 %v666_v0  ;;  %428 = vmatprep.mubr.msk.bf16.mxu0 %vm667_vm1, %v666_v0  ;;  %120 = vst.msk [vmem:[#allocation2] sm:$0xff] %vm119_vm0, %v666_v0  ;;  %121 = vst.msk [vmem:[#allocation2 + $0x8] sm:$0xff] %vm119_vm0, %v666_v0  ;;  %v457_v2 = vld [vmem:[#allocation6 + $0x8] sm:$0xff]   ;;  %v458_v3 = vld [vmem:[#allocation3] sm:$0xff]   ;;  %vm250_vm2 = vcmask 523264   ;;  %vm372_vm3 = vcmask 257024  }
  0x82   :  { %432 = vmatprep.subr.bf16.mxu1 %v666_v0  ;;  %440 = vmatprep.mubr.msk.bf16.mxu1 %vm667_vm1, %v666_v0  ;;  %v459_v4 = vld [vmem:[#allocation9] sm:$0xff]   ;;  %v460_v5 = vld [vmem:[#allocation9 + $0x8] sm:$0xff]   ;;  %v461_v6 = vld [vmem:[#allocation9 + $0x10] sm:$0xff]   ;;  %s668_s6 = smov [#allocation15]  }
  0x83   :  { %425 = vmatpush3.bf16.msra.mxu0 %v456_v1  ;;  %433 = vmatpush3.bf16.msra.mxu1 %v459_v4  ;;  %v462_v7 = vld [vmem:[#allocation9 + $0x18] sm:$0xff]   ;;  %v413_v42 = vld [vmem:[#allocation3] sm:$0xff]   ;;  %v405_v43 = vld [vmem:[#allocation11] ss:$0 sm:$0xff]  ;;  %s380_s30 = sshll.u32 %s668_s6, 4  ;;  %s381_s30 = int_to_ptr.vmem [resolvable:$true] %s380_s30 }
  0x84   :  { %426 = vmatprep.subr.bf16.mxu0 %v666_v0  ;;  %434 = vmatprep.subr.bf16.mxu1 %v666_v0  ;;  %v395_v8 = vld [vmem:[#allocation8] ss:$0 sm:$0xff]  ;;  %v414_v44 = vunpack.c.l.bf16 %v413_v42  ;;  %v415_v47 = vunpack.c.h.bf16 %v413_v42  ;;  %s625_s17 = scalar_lea.vmem %s381_s30, 128  ;;  %p630_p1 = scmp.lt.s32.totalorder %s381_s30, %s381_s30 }
  0x85   :  { %p626_p0 = scmp.ne.s32.totalorder %s381_s30, %s625_s17  ;;  %p631_p2 = scmp.lt.s32.totalorder %s625_s17, %s625_s17 }
  0x87   :  { %427 = vmatpush3.bf16.msra.mxu0 %v457_v2  ;;  %435 = vmatpush3.bf16.msra.mxu1 %v460_v5  ;;  %p632_p3 = por %p631_p2, %p630_p1 }
  0x88   :  { %436 = vmatprep.subr.bf16.mxu1 %v666_v0  ;;  %v215_v34 = vld [vmem:[#allocation2] sm:$0xff]  ;;  %v216_v36 = vld [vmem:[#allocation2 + $0x8] sm:$0xff] }
  0x89   :  { %p633_p4 = pnand %p632_p3, %p626_p0 }
  0x8a   :  { %429 = vmatmul.mubr.msk.bf16.vlgmr.msra.gmra.mrb[0].mxu0 %vm119_vm0, %v458_v3 }
  0x8b   :  { %437 = vmatpush3.bf16.msra.mxu1 %v461_v6 }
  0x8c   :  { %438 = vmatprep.subr.bf16.mxu1 %v666_v0 }
  0x8f   :  { %439 = vmatpush3.bf16.msra.mxu1 %v462_v7  ;;  %v406_v7 = vld [vmem:[#allocation12] ss:$0 sm:$0xff] }
 0x15d   :  { %v190_v9 = vpop.f32.mrb[0].mxu0 }
 0x15e   :  { %v191_v10 = vadd.f32 %v395_v8, %v190_v9  ;;  %v430_v11 = vpop.f32.mrb[1].mxu0  ;;  %v407_v9 = vld [vmem:[#allocation14] ss:$0 sm:$0xff] }
 0x15f   :  { %v193_v12 = vpop.f32.mrb[2].mxu0 }
 0x160   :  { %v199_v13 = vmul.f32 0.044715, %v191_v10  ;;  %v194_v14 = vadd.f32 %v395_v8, %v193_v12  ;;  %v431_v15 = vpop.f32.mrb[3].mxu0  ;;  %v197_v28 = vmul.f32 0.5, %v191_v10 }
 0x162   :  { %v201_v16 = vmul.f32 %v199_v13, %v191_v10  ;;  %v200_v17 = vmul.f32 0.044715, %v194_v14  ;;  %v198_v29 = vmul.f32 0.5, %v194_v14 }
 0x164   :  { %v203_v18 = vmul.f32 %v201_v16, %v191_v10  ;;  %v202_v19 = vmul.f32 %v200_v17, %v194_v14 }
 0x166   :  { %v205_v20 = vadd.f32 %v203_v18, %v191_v10  ;;  %v204_v21 = vmul.f32 %v202_v19, %v194_v14 }
 0x168   :  { %v207_v22 = vmul.f32 0.7978846, %v205_v20  ;;  %v206_v23 = vadd.f32 %v204_v21, %v194_v14 }
 0x16a   :  { %463 = vtanh.f32 %v207_v22  ;;  %v208_v24 = vmul.f32 0.7978846, %v206_v23 }
 0x16c   :  { %465 = vtanh.f32 %v208_v24 }
 0x174   :  { %v464_v25 = vpop.eup %463 }
 0x175   :  { %v211_v26 = vadd.f32 1.0, %v464_v25 }
 0x176   :  { %v466_v27 = vpop.eup %465 }
 0x177   :  { %v212_v30 = vadd.f32 1.0, %v466_v27  ;;  %v213_v31 = vmul.f32 %v211_v26, %v197_v28 }
 0x179   :  { %v214_v32 = vmul.f32 %v212_v30, %v198_v29 }
 0x17b   :  { %v217_v33 = vpack.c.bf16 %v214_v32, %v213_v31 }
 0x17d   :  { %441 = vmatmul.mubr.msk.bf16.vlgmr.msra.gmra.mrb[0].mxu1 %vm250_vm2, %v217_v33 }
 0x250   :  { %v288_v35 = vpop.f32.mrb[0].mxu1 }
 0x251   :  { %v295_v37 = vadd.f32 %v288_v35, %v215_v34  ;;  %v442_v38 = vpop.f32.mrb[1].mxu1 }
 0x252   :  { %v291_v39 = vpop.f32.mrb[2].mxu1 }
 0x253   :  { %297 = vst.msk [vmem:[#allocation2] sm:$0xff] %vm119_vm0, %v295_v37  ;;  %v296_v40 = vadd.f32 %v291_v39, %v216_v36  ;;  %v443_v41 = vpop.f32.mrb[3].mxu1 }
 0x255   :  { %298 = vst.msk [vmem:[#allocation2 + $0x8] sm:$0xff] %vm119_vm0, %v296_v40 }
 0x25a   :  { %v302_v45 = vld [vmem:[#allocation2] sm:$0xff] }
 0x25b   :  { %v311_v46 = vadd.f32 %v405_v43, %v302_v45 }
 0x25c   :  { %v303_v48 = vld [vmem:[#allocation2 + $0x8] sm:$0xff] }
 0x25d   :  { %v317_v49 = vadd.f32 %v414_v44, %v311_v46  ;;  %v312_v50 = vadd.f32 %v405_v43, %v303_v48 }
 0x25f   :  { %v321_v51 = vsel %vm119_vm0, %v317_v49, 0.0  ;;  %v318_v52 = vadd.f32 %v415_v47, %v312_v50 }
 0x260   :  { %322 = vadd.xlane.f32.xlu0 %v321_v51 }
 0x261   :  { %v324_v53 = vsel %vm119_vm0, %v318_v52, 0.0 }
 0x264   :  { %325 = vadd.xlane.f32.xlu0 %v324_v53 }
 0x2ed   :  { %v323_v54 = vpop.xlane.xlu0 %322 }
 0x2ee   :  { %v328_v55 = vmul.f32 0.03125, %v323_v54 }
 0x2f0   :  { %v330_v56 = vsub.f32 %v317_v49, %v328_v55 }
 0x2f1   :  { %v326_v57 = vpop.xlane.xlu0 %325 }
 0x2f2   :  { %v329_v58 = vmul.f32 0.03125, %v326_v57  ;;  %v332_v59 = vmul.f32 %v330_v56, %v330_v56 }
 0x2f4   :  { %v331_v60 = vsub.f32 %v318_v52, %v329_v58  ;;  %v334_v61 = vsel %vm119_vm0, %v332_v59, 0.0 }
 0x2f5   :  { %335 = vadd.xlane.f32.xlu1 %v334_v61 }
 0x2f6   :  { %v333_v62 = vmul.f32 %v331_v60, %v331_v60 }
 0x2f8   :  { %v337_v63 = vsel %vm119_vm0, %v333_v62, 0.0 }
 0x2f9   :  { %338 = vadd.xlane.f32.xlu1 %v337_v63 }
 0x382   :  { %v336_v0 = vpop.xlane.xlu1 %335 }
 0x383   :  { %v340_v1 = vmul.f32 0.03125, %v336_v0 }
 0x385   :  { %v342_v2 = vadd.f32 1e-05, %v340_v1 }
 0x386   :  { %v339_v3 = vpop.xlane.xlu1 %338 }
 0x387   :  { %467 = vrsqrt.f32 %v342_v2  ;;  %v341_v4 = vmul.f32 0.03125, %v339_v3 }
 0x389   :  { %v343_v5 = vadd.f32 1e-05, %v341_v4 }
 0x38b   :  { %469 = vrsqrt.f32 %v343_v5 }
 0x391   :  { %v468_v6 = vpop.eup %467 }
 0x392   :  { %v346_v8 = vmul.f32 %v468_v6, %v330_v56 }
 0x394   :  { %v354_v10 = vmul.f32 %v406_v7, %v346_v8 }
 0x395   :  { %v470_v11 = vpop.eup %469 }
 0x396   :  { %v347_v12 = vmul.f32 %v470_v11, %v331_v60  ;;  %v362_v13 = vadd.f32 %v407_v9, %v354_v10 }
 0x398   :  { %v355_v14 = vmul.f32 %v406_v7, %v347_v12  ;;  %v410_v15 = vpack.c.bf16 %v362_v13, %v362_v13 }
 0x39a   :  { %v363_v16 = vadd.f32 %v407_v9, %v355_v14  ;;  %373 = vst.msk [vmem:[#allocation15] sm:$0xf] %vm372_vm3, %v410_v15 }
 0x39c   :  { %v411_v17 = vpack.c.bf16 %v363_v16, %v363_v16 }
 0x39e   :  { %374 = vst.msk [vmem:[#allocation15 + $0x4] sm:$0xf] %vm372_vm3, %v411_v17 }
 0x39f   :  { %636 = shalt.err (!%p633_p4)
}
 0x3a0   :  { %s637_s20 = scalar_lea.hbm %s847_s7, 128 }
 0x3a1   :  { %p638_p5 = scmp.ne.s32.totalorder %s847_s7, %s637_s20  ;;  %p641_p6 = scmp.lt.u32.totalorder %s637_s20, %s847_s7 }
 0x3a3   :  { %p643_p7 = pnand %p641_p6, %p638_p5 }
 0x3a5   :  { %646 = shalt.err (!%p643_p7)
}
 0x3a6   :  { %386 = dma.vmem_to_hbm [thread:$0]  %s381_s30, 128, %s847_s7, [#allocation5], %s659_s13, %s659_s13, %s660_s14  }
 0x3a7   :  { %655 = dma.done.wait [#allocation5], 128  }
 0x3a8   :  { %656 = vsyncadd [#allocation5], 4294967168 }
 0x3a9   :  { %390 = vsyncpa [#allocation4], 1 }
 0x3aa   :  { %391 = vsyncpa [#allocation7], 1 }
 0x3ab   :  { %392 = vsyncpa [#allocation10], 1 }
 0x3ac   :  { %393 = vsyncpa [#allocation13], 1 }
 0x3ad   :  { %394 = vsyncpa [#allocation5], 1 }

// kernel: roberta_forward.11
= control target key start
LH: loop header
LB: loop body
LE: loop exit
PB: predicated region body
PF: predicated region fallthrough
CT: control target
= control target key end

     0   :  { %8 = vsyncpa [#allocation4], 0  ;;  %s401_s0 = inlined_call_operand.hbm [shape: bf16[16,32], index: 0, kind: input, shape index: {}]   ;;  %s402_s1 = inlined_call_operand.hbm [shape: bf16[32,96], index: 1, kind: input, shape index: {}]   ;;  %s403_s2 = inlined_call_operand.hbm [shape: f32[1,96], index: 2, kind: input, shape index: {}]   ;;  %s404_s3 = inlined_call_operand.hbm [shape: bf16[16,96], index: 3, kind: output, shape index: {}]  }
   0x1   :  { %9 = vsyncpa [#allocation7], 0 }
   0x2   :  { %10 = vsyncpa [#allocation5], 0  ;;  %s305_s12 = smov [#allocation6]   ;;  %s306_s14 = smov [#allocation3]  }
   0x3   :  { %s28_s13 = sshll.u32 %s305_s12, 4  ;;  %s16_s15 = sshll.u32 %s306_s14, 4  ;;  %s29_s13 = int_to_ptr.vmem [resolvable:$true] %s28_s13  ;;  %s333_s15 = int_to_ptr.vmem [resolvable:$true] %s16_s15 }
   0x4   :  { %s211_s18 = scalar_lea.hbm %s402_s1, 256 }
   0x5   :  { %p212_p0 = scmp.ne.s32.totalorder %s402_s1, %s211_s18  ;;  %p215_p1 = scmp.lt.u32.totalorder %s211_s18, %s402_s1 }
   0x7   :  { %p217_p2 = pnand %p215_p1, %p212_p0 }
   0x9   :  { %220 = shalt.err (!%p217_p2)
}
   0xa   :  { %s221_s23 = scalar_lea.vmem %s29_s13, 256  ;;  %p226_p4 = scmp.lt.s32.totalorder %s29_s13, %s29_s13 }
   0xb   :  { %p222_p3 = scmp.ne.s32.totalorder %s29_s13, %s221_s23  ;;  %p227_p5 = scmp.lt.s32.totalorder %s221_s23, %s221_s23 }
   0xd   :  { %p228_p6 = por %p227_p5, %p226_p4 }
   0xf   :  { %p229_p7 = pnand %p228_p6, %p222_p3 }
  0x11   :  { %232 = shalt.err (!%p229_p7)
}
  0x12   :  { %s307_s24 = smov 64   ;;  %s308_s25 = smov 4  }
  0x13   :  { %34 = dma.hbm_to_vmem [thread:$0]  %s402_s1, 256, %s29_s13, [#allocation7], %s307_s24, %s307_s24, %s308_s25  }
  0x14   :  { %s233_s30 = scalar_lea.hbm %s401_s0, 128 }
  0x15   :  { %p234_p8 = scmp.ne.s32.totalorder %s401_s0, %s233_s30  ;;  %p237_p9 = scmp.lt.u32.totalorder %s233_s30, %s401_s0 }
  0x17   :  { %p239_p10 = pnand %p237_p9, %p234_p8 }
  0x19   :  { %242 = shalt.err (!%p239_p10)
}
  0x1a   :  { %s243_s8 = scalar_lea.vmem %s333_s15, 128  ;;  %p248_p12 = scmp.lt.s32.totalorder %s333_s15, %s333_s15 }
  0x1b   :  { %p244_p11 = scmp.ne.s32.totalorder %s333_s15, %s243_s8  ;;  %p249_p13 = scmp.lt.s32.totalorder %s243_s8, %s243_s8 }
  0x1d   :  { %p250_p0 = por %p249_p13, %p248_p12 }
  0x1f   :  { %p251_p1 = pnand %p250_p0, %p244_p11 }
  0x21   :  { %254 = shalt.err (!%p251_p1)
}
  0x22   :  { %22 = dma.hbm_to_vmem [thread:$0]  %s401_s0, 128, %s333_s15, [#allocation4], %s307_s24, %s307_s24, %s308_s25  }
  0x23   :  { %s309_s10 = smov [#allocation8]   ;;  %s255_s14 = scalar_lea.hbm %s403_s2, 16 }
  0x24   :  { %s41_s11 = sshll.u32 %s309_s10, 4  ;;  %p256_p2 = scmp.ne.s32.totalorder %s403_s2, %s255_s14  ;;  %s42_s11 = int_to_ptr.vmem [resolvable:$true] %s41_s11 }
  0x25   :  { %p259_p3 = scmp.lt.u32.totalorder %s255_s14, %s403_s2 }
  0x27   :  { %p261_p4 = pnand %p259_p3, %p256_p2 }
  0x29   :  { %264 = shalt.err (!%p261_p4)
}
  0x2a   :  { %s265_s20 = scalar_lea.vmem %s42_s11, 16  ;;  %s269_s0 = scalar_lea.vmem %s42_s11, 32 }
  0x2b   :  { %p266_p5 = scmp.ne.s32.totalorder %s42_s11, %s265_s20  ;;  %p270_p6 = scmp.lt.s32.totalorder %s42_s11, %s42_s11 }
  0x2c   :  { %p271_p7 = scmp.lt.s32.totalorder %s269_s0, %s265_s20 }
  0x2e   :  { %p272_p8 = por %p271_p7, %p270_p6 }
  0x30   :  { %p273_p9 = pnand %p272_p8, %p266_p5 }
  0x32   :  { %276 = shalt.err (!%p273_p9)
}
  0x33   :  { %44 = dma.hbm_to_vmem [thread:$0]  %s403_s2, 16, %s42_s11, [#allocation7]  }
  0x34   :  { %299 = dma.done.wait [#allocation4], 128  }
  0x35   :  { %300 = vsyncadd [#allocation4], 4294967168 }
  0x36   :  { %301 = dma.done.wait [#allocation7], 272  }
  0x37   :  { %302 = vsyncadd [#allocation7], 4294967024  ;;  %vm59_vm0 = vcmask 785408   ;;  %v310_v0 = vmov 0.0   ;;  %vm311_vm1 = vmmov 0   ;;  %v208_v1 = vld [vmem:[#allocation6] sm:$0xff]  }
  0x38   :  { %60 = vst.msk [vmem:[#allocation2] sm:$0xff] %vm59_vm0, %v310_v0  ;;  %61 = vst.msk [vmem:[#allocation2 + $0x8] sm:$0xff] %vm59_vm0, %v310_v0  ;;  %192 = vmatprep.subr.bf16.mxu0 %v310_v0  ;;  %196 = vmatprep.mubr.msk.bf16.mxu0 %vm311_vm1, %v310_v0  ;;  %v209_v2 = vld [vmem:[#allocation6 + $0x8] sm:$0xff]   ;;  %v210_v3 = vld [vmem:[#allocation3] sm:$0xff]   ;;  %vm87_vm2 = vcmask 261120   ;;  %vm159_vm3 = vcmask 781312  }
  0x39   :  { %193 = vmatpush3.bf16.msra.mxu0 %v208_v1  ;;  %v184_v12 = vld [vmem:[#allocation8] ss:$0 sm:$0xff]  ;;  %s312_s2 = smov [#allocation9]  }
  0x3a   :  { %194 = vmatprep.subr.bf16.mxu0 %v310_v0  ;;  %s167_s22 = sshll.u32 %s312_s2, 4  ;;  %s168_s22 = int_to_ptr.vmem [resolvable:$true] %s167_s22 }
  0x3b   :  { %s277_s23 = scalar_lea.vmem %s168_s22, 128  ;;  %p282_p11 = scmp.lt.s32.totalorder %s168_s22, %s168_s22 }
  0x3c   :  { %p278_p10 = scmp.ne.s32.totalorder %s168_s22, %s277_s23  ;;  %p283_p12 = scmp.lt.s32.totalorder %s277_s23, %s277_s23 }
  0x3d   :  { %195 = vmatpush3.bf16.msra.mxu0 %v209_v2 }
  0x3e   :  { %p284_p13 = por %p283_p12, %p282_p11 }
  0x3f   :  { %v62_v4 = vld [vmem:[#allocation2] sm:$0xff]  ;;  %v63_v6 = vld [vmem:[#allocation2 + $0x8] sm:$0xff] }
  0x40   :  { %197 = vmatmul.mubr.msk.bf16.vlgmr.msra.gmra.mrb[0].mxu0 %vm87_vm2, %v210_v3  ;;  %p285_p0 = pnand %p284_p13, %p278_p10 }
 0x113   :  { %v125_v5 = vpop.f32.mrb[0].mxu0 }
 0x114   :  { %v132_v7 = vadd.f32 %v125_v5, %v62_v4  ;;  %v198_v8 = vpop.f32.mrb[1].mxu0 }
 0x115   :  { %v128_v9 = vpop.f32.mrb[2].mxu0 }
 0x116   :  { %135 = vst.msk [vmem:[#allocation2] sm:$0xff] %vm59_vm0, %v132_v7  ;;  %v133_v10 = vadd.f32 %v128_v9, %v63_v6  ;;  %v199_v11 = vpop.f32.mrb[3].mxu0 }
 0x118   :  { %136 = vst.msk [vmem:[#allocation2 + $0x8] sm:$0xff] %vm59_vm0, %v133_v10 }
 0x11d   :  { %v140_v13 = vld [vmem:[#allocation2] sm:$0xff] }
 0x11e   :  { %v149_v14 = vadd.f32 %v184_v12, %v140_v13 }
 0x11f   :  { %v141_v15 = vld [vmem:[#allocation2 + $0x8] sm:$0xff] }
 0x120   :  { %v150_v16 = vadd.f32 %v184_v12, %v141_v15  ;;  %v187_v17 = vpack.c.bf16 %v149_v14, %v149_v14 }
 0x122   :  { %v188_v18 = vpack.c.bf16 %v150_v16, %v150_v16  ;;  %160 = vst.msk [vmem:[#allocation9] sm:$0xf] %vm159_vm3, %v187_v17 }
 0x124   :  { %161 = vst.msk [vmem:[#allocation9 + $0x4] sm:$0xf] %vm159_vm3, %v188_v18 }
 0x125   :  { %288 = shalt.err (!%p285_p0)
}
 0x126   :  { %s289_s28 = scalar_lea.hbm %s404_s3, 128 }
 0x127   :  { %p290_p1 = scmp.ne.s32.totalorder %s404_s3, %s289_s28  ;;  %p293_p2 = scmp.lt.u32.totalorder %s289_s28, %s404_s3 }
 0x129   :  { %p295_p3 = pnand %p293_p2, %p290_p1 }
 0x12b   :  { %298 = shalt.err (!%p295_p3)
}
 0x12c   :  { %173 = dma.vmem_to_hbm [thread:$0]  %s168_s22, 128, %s404_s3, [#allocation5], %s307_s24, %s307_s24, %s308_s25  }
 0x12d   :  { %303 = dma.done.wait [#allocation5], 128  }
 0x12e   :  { %304 = vsyncadd [#allocation5], 4294967168 }
 0x12f   :  { %177 = vsyncpa [#allocation4], 1 }
 0x130   :  { %178 = vsyncpa [#allocation7], 1 }
 0x131   :  { %179 = vsyncpa [#allocation5], 1 }

// kernel: roberta_forward.13
= control target key start
LH: loop header
LB: loop body
LE: loop exit
PB: predicated region body
PF: predicated region fallthrough
CT: control target
= control target key end

     0   :  { %11 = vsyncpa [#allocation3], 0  ;;  %s620_s0 = inlined_call_operand.hbm [shape: bf16[16,32], index: 0, kind: input, shape index: {}]   ;;  %s621_s1 = inlined_call_operand.hbm [shape: bf16[32,32], index: 1, kind: input, shape index: {}]   ;;  %s622_s2 = inlined_call_operand.hbm [shape: f32[1,32], index: 2, kind: input, shape index: {}]   ;;  %s623_s3 = inlined_call_operand.hbm [shape: bf16[16,32], index: 3, kind: input, shape index: {}]   ;;  %s624_s4 = inlined_call_operand.hbm [shape: f32[1,32], index: 4, kind: input, shape index: {}]   ;;  %s625_s5 = inlined_call_operand.hbm [shape: f32[1,32], index: 5, kind: input, shape index: {}]   ;;  %s626_s6 = inlined_call_operand.hbm [shape: bf16[16,32], index: 6, kind: output, shape index: {}]  }
   0x1   :  { %12 = vsyncpa [#allocation6], 0 }
   0x2   :  { %13 = vsyncpa [#allocation9], 0 }
   0x3   :  { %14 = vsyncpa [#allocation12], 0 }
   0x4   :  { %15 = vsyncpa [#allocation4], 0  ;;  %s466_s21 = smov [#allocation5]   ;;  %s467_s23 = smov [#allocation8]  }
   0x5   :  { %s33_s22 = sshll.u32 %s466_s21, 4  ;;  %s55_s24 = sshll.u32 %s467_s23, 4  ;;  %s34_s22 = int_to_ptr.vmem [resolvable:$true] %s33_s22  ;;  %s512_s24 = int_to_ptr.vmem [resolvable:$true] %s55_s24 }
   0x6   :  { %s302_s27 = scalar_lea.hbm %s621_s1, 256 }
   0x7   :  { %p303_p0 = scmp.ne.s32.totalorder %s621_s1, %s302_s27  ;;  %p306_p1 = scmp.lt.u32.totalorder %s302_s27, %s621_s1 }
   0x9   :  { %p308_p2 = pnand %p306_p1, %p303_p0 }
   0xb   :  { %311 = shalt.err (!%p308_p2)
}
   0xc   :  { %s312_s8 = scalar_lea.vmem %s34_s22, 256  ;;  %p317_p4 = scmp.lt.s32.totalorder %s34_s22, %s34_s22 }
   0xd   :  { %p313_p3 = scmp.ne.s32.totalorder %s34_s22, %s312_s8  ;;  %p318_p5 = scmp.lt.s32.totalorder %s312_s8, %s312_s8 }
   0xf   :  { %p319_p6 = por %p318_p5, %p317_p4 }
  0x11   :  { %p320_p7 = pnand %p319_p6, %p313_p3 }
  0x13   :  { %323 = shalt.err (!%p320_p7)
}
  0x14   :  { %s468_s9 = smov 64   ;;  %s469_s10 = smov 4  }
  0x15   :  { %39 = dma.hbm_to_vmem [thread:$0]  %s621_s1, 256, %s34_s22, [#allocation6], %s468_s9, %s468_s9, %s469_s10  }
  0x16   :  { %s324_s15 = scalar_lea.hbm %s623_s3, 128 }
  0x17   :  { %p325_p8 = scmp.ne.s32.totalorder %s623_s3, %s324_s15  ;;  %p328_p9 = scmp.lt.u32.totalorder %s324_s15, %s623_s3 }
  0x19   :  { %p330_p10 = pnand %p328_p9, %p325_p8 }
  0x1b   :  { %333 = shalt.err (!%p330_p10)
}
  0x1c   :  { %s334_s20 = scalar_lea.vmem %s512_s24, 128  ;;  %p339_p12 = scmp.lt.s32.totalorder %s512_s24, %s512_s24 }
  0x1d   :  { %p335_p11 = scmp.ne.s32.totalorder %s512_s24, %s334_s20  ;;  %p340_p13 = scmp.lt.s32.totalorder %s334_s20, %s334_s20 }
  0x1f   :  { %p341_p0 = por %p340_p13, %p339_p12 }
  0x21   :  { %p342_p1 = pnand %p341_p0, %p335_p11 }
  0x23   :  { %345 = shalt.err (!%p342_p1)
}
  0x24   :  { %61 = dma.hbm_to_vmem [thread:$0]  %s623_s3, 128, %s512_s24, [#allocation9], %s468_s9, %s468_s9, %s469_s10  }
  0x25   :  { %s470_s22 = smov [#allocation2]   ;;  %s471_s25 = smov [#allocation7]  }
  0x26   :  { %s21_s23 = sshll.u32 %s470_s22, 4  ;;  %s46_s26 = sshll.u32 %s471_s25, 4  ;;  %s22_s23 = int_to_ptr.vmem [resolvable:$true] %s21_s23  ;;  %s47_s26 = int_to_ptr.vmem [resolvable:$true] %s46_s26 }
  0x27   :  { %s346_s29 = scalar_lea.hbm %s620_s0, 128 }
  0x28   :  { %p347_p2 = scmp.ne.s32.totalorder %s620_s0, %s346_s29  ;;  %p350_p3 = scmp.lt.u32.totalorder %s346_s29, %s620_s0 }
  0x2a   :  { %p352_p4 = pnand %p350_p3, %p347_p2 }
  0x2c   :  { %355 = shalt.err (!%p352_p4)
}
  0x2d   :  { %s356_s3 = scalar_lea.vmem %s22_s23, 128  ;;  %p361_p6 = scmp.lt.s32.totalorder %s22_s23, %s22_s23 }
  0x2e   :  { %p357_p5 = scmp.ne.s32.totalorder %s22_s23, %s356_s3  ;;  %p362_p7 = scmp.lt.s32.totalorder %s356_s3, %s356_s3 }
  0x30   :  { %p363_p8 = por %p362_p7, %p361_p6 }
  0x32   :  { %p364_p9 = pnand %p363_p8, %p357_p5 }
  0x34   :  { %367 = shalt.err (!%p364_p9)
}
  0x35   :  { %27 = dma.hbm_to_vmem [thread:$0]  %s620_s0, 128, %s22_s23, [#allocation3], %s468_s9, %s468_s9, %s469_s10  }
  0x36   :  { %s368_s15 = scalar_lea.hbm %s622_s2, 16 }
  0x37   :  { %p369_p10 = scmp.ne.s32.totalorder %s622_s2, %s368_s15  ;;  %p372_p11 = scmp.lt.u32.totalorder %s368_s15, %s622_s2 }
  0x39   :  { %p374_p12 = pnand %p372_p11, %p369_p10 }
  0x3b   :  { %377 = shalt.err (!%p374_p12)
}
  0x3c   :  { %s378_s20 = scalar_lea.vmem %s47_s26, 16  ;;  %s382_s1 = scalar_lea.vmem %s47_s26, 32 }
  0x3d   :  { %p379_p13 = scmp.ne.s32.totalorder %s47_s26, %s378_s20  ;;  %p383_p0 = scmp.lt.s32.totalorder %s47_s26, %s47_s26 }
  0x3e   :  { %p384_p1 = scmp.lt.s32.totalorder %s382_s1, %s378_s20 }
  0x40   :  { %p385_p2 = por %p384_p1, %p383_p0 }
  0x42   :  { %p386_p3 = pnand %p385_p2, %p379_p13 }
  0x44   :  { %389 = shalt.err (!%p386_p3)
}
  0x45   :  { %49 = dma.hbm_to_vmem [thread:$0]  %s622_s2, 16, %s47_s26, [#allocation6]  }
  0x46   :  { %s472_s22 = smov [#allocation10]   ;;  %s473_s25 = smov [#allocation11]  }
  0x47   :  { %s68_s23 = sshll.u32 %s472_s22, 4  ;;  %s78_s27 = sshll.u32 %s473_s25, 4  ;;  %s69_s23 = int_to_ptr.vmem [resolvable:$true] %s68_s23  ;;  %s79_s27 = int_to_ptr.vmem [resolvable:$true] %s78_s27 }
  0x48   :  { %s390_s30 = scalar_lea.hbm %s624_s4, 16 }
  0x49   :  { %p391_p4 = scmp.ne.s32.totalorder %s624_s4, %s390_s30  ;;  %p394_p5 = scmp.lt.u32.totalorder %s390_s30, %s624_s4 }
  0x4b   :  { %p396_p6 = pnand %p394_p5, %p391_p4 }
  0x4d   :  { %399 = shalt.err (!%p396_p6)
}
  0x4e   :  { %s400_s2 = scalar_lea.vmem %s69_s23, 16  ;;  %s404_s26 = scalar_lea.vmem %s69_s23, 32 }
  0x4f   :  { %p401_p7 = scmp.ne.s32.totalorder %s69_s23, %s400_s2  ;;  %p405_p8 = scmp.lt.s32.totalorder %s69_s23, %s69_s23 }
  0x50   :  { %p406_p9 = scmp.lt.s32.totalorder %s404_s26, %s400_s2 }
  0x52   :  { %p407_p10 = por %p406_p9, %p405_p8 }
  0x54   :  { %p408_p11 = pnand %p407_p10, %p401_p7 }
  0x56   :  { %411 = shalt.err (!%p408_p11)
}
  0x57   :  { %71 = dma.hbm_to_vmem [thread:$0]  %s624_s4, 16, %s69_s23, [#allocation9]  }
  0x58   :  { %s412_s15 = scalar_lea.hbm %s625_s5, 16 }
  0x59   :  { %p413_p12 = scmp.ne.s32.totalorder %s625_s5, %s412_s15  ;;  %p416_p13 = scmp.lt.u32.totalorder %s412_s15, %s625_s5 }
  0x5b   :  { %p418_p0 = pnand %p416_p13, %p413_p12 }
  0x5d   :  { %421 = shalt.err (!%p418_p0)
}
  0x5e   :  { %s422_s20 = scalar_lea.vmem %s79_s27, 16  ;;  %s426_s1 = scalar_lea.vmem %s79_s27, 32 }
  0x5f   :  { %p423_p1 = scmp.ne.s32.totalorder %s79_s27, %s422_s20  ;;  %p427_p2 = scmp.lt.s32.totalorder %s79_s27, %s79_s27 }
  0x60   :  { %p428_p3 = scmp.lt.s32.totalorder %s426_s1, %s422_s20 }
  0x62   :  { %p429_p4 = por %p428_p3, %p427_p2 }
  0x64   :  { %p430_p5 = pnand %p429_p4, %p423_p1 }
  0x66   :  { %433 = shalt.err (!%p430_p5)
}
  0x67   :  { %81 = dma.hbm_to_vmem [thread:$0]  %s625_s5, 16, %s79_s27, [#allocation12]  }
  0x68   :  { %456 = dma.done.wait [#allocation3], 128  }
  0x69   :  { %457 = vsyncadd [#allocation3], 4294967168 }
  0x6a   :  { %458 = dma.done.wait [#allocation6], 272  }
  0x6b   :  { %459 = vsyncadd [#allocation6], 4294967024 }
  0x6c   :  { %460 = dma.done.wait [#allocation9], 144  }
  0x6d   :  { %461 = vsyncadd [#allocation9], 4294967152 }
  0x6e   :  { %462 = dma.done.wait [#allocation12], 16  }
  0x6f   :  { %463 = vsyncadd [#allocation12], 4294967280  ;;  %v474_v0 = vmov 0.0   ;;  %vm475_vm0 = vmmov 0   ;;  %v295_v1 = vld [vmem:[#allocation5] sm:$0xff]   ;;  %v296_v2 = vld [vmem:[#allocation5 + $0x8] sm:$0xff]  }
  0x70   :  { %276 = vmatprep.subr.bf16.mxu0 %v474_v0  ;;  %280 = vmatprep.mubr.msk.bf16.mxu0 %vm475_vm0, %v474_v0  ;;  %v297_v3 = vld [vmem:[#allocation2] sm:$0xff]   ;;  %vm131_vm1 = vcmask 261120   ;;  %v258_v5 = vld [vmem:[#allocation7] ss:$0 sm:$0xff]  ;;  %vm235_vm2 = vcmask 257024   ;;  %s476_s5 = smov [#allocation13]  }
  0x71   :  { %277 = vmatpush3.bf16.msra.mxu0 %v295_v1  ;;  %v270_v4 = vld [vmem:[#allocation8] sm:$0xff]   ;;  %v263_v35 = vld [vmem:[#allocation10] ss:$0 sm:$0xff]  ;;  %v264_v37 = vld [vmem:[#allocation11] ss:$0 sm:$0xff]  ;;  %s243_s21 = sshll.u32 %s476_s5, 4  ;;  %s244_s21 = int_to_ptr.vmem [resolvable:$true] %s243_s21 }
  0x72   :  { %278 = vmatprep.subr.bf16.mxu0 %v474_v0  ;;  %v271_v6 = vunpack.c.l.bf16 %v270_v4  ;;  %v272_v10 = vunpack.c.h.bf16 %v270_v4  ;;  %s434_s22 = scalar_lea.vmem %s244_s21, 128  ;;  %p439_p7 = scmp.lt.s32.totalorder %s244_s21, %s244_s21 }
  0x73   :  { %p435_p6 = scmp.ne.s32.totalorder %s244_s21, %s434_s22  ;;  %p440_p8 = scmp.lt.s32.totalorder %s434_s22, %s434_s22 }
  0x75   :  { %279 = vmatpush3.bf16.msra.mxu0 %v296_v2  ;;  %p441_p9 = por %p440_p8, %p439_p7 }
  0x77   :  { %p442_p10 = pnand %p441_p9, %p435_p6 }
  0x78   :  { %281 = vmatmul.mubr.msk.bf16.vlgmr.msra.gmra.mrb[0].mxu0 %vm131_vm1, %v297_v3 }
 0x14b   :  { %v169_v7 = vpop.f32.mrb[0].mxu0 }
 0x14c   :  { %v170_v8 = vadd.f32 %v258_v5, %v169_v7  ;;  %v282_v9 = vpop.f32.mrb[1].mxu0 }
 0x14d   :  { %v172_v11 = vpop.f32.mrb[2].mxu0 }
 0x14e   :  { %v173_v12 = vadd.f32 %v258_v5, %v172_v11  ;;  %v283_v13 = vpop.f32.mrb[3].mxu0  ;;  %v180_v14 = vadd.f32 %v271_v6, %v170_v8 }
 0x150   :  { %v184_v15 = vsel %vm131_vm1, %v180_v14, 0.0  ;;  %v181_v16 = vadd.f32 %v272_v10, %v173_v12 }
 0x151   :  { %185 = vadd.xlane.f32.xlu0 %v184_v15 }
 0x152   :  { %v187_v17 = vsel %vm131_vm1, %v181_v16, 0.0 }
 0x155   :  { %188 = vadd.xlane.f32.xlu0 %v187_v17 }
 0x1de   :  { %v186_v18 = vpop.xlane.xlu0 %185 }
 0x1df   :  { %v191_v19 = vmul.f32 0.03125, %v186_v18 }
 0x1e1   :  { %v193_v20 = vsub.f32 %v180_v14, %v191_v19 }
 0x1e2   :  { %v189_v21 = vpop.xlane.xlu0 %188 }
 0x1e3   :  { %v192_v22 = vmul.f32 0.03125, %v189_v21  ;;  %v195_v23 = vmul.f32 %v193_v20, %v193_v20 }
 0x1e5   :  { %v194_v24 = vsub.f32 %v181_v16, %v192_v22  ;;  %v197_v25 = vsel %vm131_vm1, %v195_v23, 0.0 }
 0x1e6   :  { %198 = vadd.xlane.f32.xlu1 %v197_v25 }
 0x1e7   :  { %v196_v26 = vmul.f32 %v194_v24, %v194_v24 }
 0x1e9   :  { %v200_v27 = vsel %vm131_vm1, %v196_v26, 0.0 }
 0x1ea   :  { %201 = vadd.xlane.f32.xlu1 %v200_v27 }
 0x273   :  { %v199_v28 = vpop.xlane.xlu1 %198 }
 0x274   :  { %v203_v29 = vmul.f32 0.03125, %v199_v28 }
 0x276   :  { %v205_v30 = vadd.f32 1e-05, %v203_v29 }
 0x277   :  { %v202_v31 = vpop.xlane.xlu1 %201 }
 0x278   :  { %298 = vrsqrt.f32 %v205_v30  ;;  %v204_v32 = vmul.f32 0.03125, %v202_v31 }
 0x27a   :  { %v206_v33 = vadd.f32 1e-05, %v204_v32 }
 0x27c   :  { %300 = vrsqrt.f32 %v206_v33 }
 0x282   :  { %v299_v34 = vpop.eup %298 }
 0x283   :  { %v209_v36 = vmul.f32 %v299_v34, %v193_v20 }
 0x285   :  { %v217_v38 = vmul.f32 %v263_v35, %v209_v36 }
 0x286   :  { %v301_v39 = vpop.eup %300 }
 0x287   :  { %v210_v40 = vmul.f32 %v301_v39, %v194_v24  ;;  %v225_v41 = vadd.f32 %v264_v37, %v217_v38 }
 0x289   :  { %v218_v42 = vmul.f32 %v263_v35, %v210_v40  ;;  %v267_v43 = vpack.c.bf16 %v225_v41, %v225_v41 }
 0x28b   :  { %v226_v44 = vadd.f32 %v264_v37, %v218_v42  ;;  %236 = vst.msk [vmem:[#allocation13] sm:$0xf] %vm235_vm2, %v267_v43 }
 0x28d   :  { %v268_v45 = vpack.c.bf16 %v226_v44, %v226_v44 }
 0x28f   :  { %237 = vst.msk [vmem:[#allocation13 + $0x4] sm:$0xf] %vm235_vm2, %v268_v45 }
 0x290   :  { %445 = shalt.err (!%p442_p10)
}
 0x291   :  { %s446_s27 = scalar_lea.hbm %s626_s6, 128 }
 0x292   :  { %p447_p11 = scmp.ne.s32.totalorder %s626_s6, %s446_s27  ;;  %p450_p12 = scmp.lt.u32.totalorder %s446_s27, %s626_s6 }
 0x294   :  { %p452_p13 = pnand %p450_p12, %p447_p11 }
 0x296   :  { %455 = shalt.err (!%p452_p13)
}
 0x297   :  { %249 = dma.vmem_to_hbm [thread:$0]  %s244_s21, 128, %s626_s6, [#allocation4], %s468_s9, %s468_s9, %s469_s10  }
 0x298   :  { %464 = dma.done.wait [#allocation4], 128  }
 0x299   :  { %465 = vsyncadd [#allocation4], 4294967168 }
 0x29a   :  { %253 = vsyncpa [#allocation3], 1 }
 0x29b   :  { %254 = vsyncpa [#allocation6], 1 }
 0x29c   :  { %255 = vsyncpa [#allocation9], 1 }
 0x29d   :  { %256 = vsyncpa [#allocation12], 1 }
 0x29e   :  { %257 = vsyncpa [#allocation4], 1 }

// kernel: roberta_forward.19
= control target key start
LH: loop header
LB: loop body
LE: loop exit
PB: predicated region body
PF: predicated region fallthrough
CT: control target
= control target key end

     0   :  { %v237_v1 = vmov 0.0   ;;  %vm238_vm0 = vmmov 0   ;;  %s305_s0 = inlined_call_operand.vmem [shape: bf16[2,32], index: 0, kind: input, shape index: {}]   ;;  %s306_s1 = inlined_call_operand.vmem [shape: bf16[32,32], index: 1, kind: input, shape index: {}]   ;;  %s307_s2 = inlined_call_operand.vmem [shape: f32[1,32], index: 2, kind: input, shape index: {}]   ;;  %s308_s3 = inlined_call_operand.vmem [shape: bf16[32,2], index: 3, kind: input, shape index: {}]   ;;  %s309_s4 = inlined_call_operand.vmem [shape: f32[1,2], index: 4, kind: input, shape index: {}]   ;;  %s310_s5 = inlined_call_operand.hbm [shape: f32[2,2], index: 5, kind: output, shape index: {}]  }
   0x1   :  { %v207_v0 = vld [vmem:[%s306_s1] sm:$0xff]   ;;  %188 = vmatprep.subr.bf16.mxu0 %v237_v1  ;;  %196 = vmatprep.subr.bf16.mxu1 %v237_v1  ;;  %v208_v2 = vld [vmem:[%s306_s1 + $0x8] sm:$0xff]  }
   0x2   :  { %189 = vmatpush3.bf16.msra.mxu0 %v207_v0  ;;  %192 = vmatprep.mubr.msk.bf16.mxu0 %vm238_vm0, %v237_v1 }
   0x3   :  { %190 = vmatprep.subr.bf16.mxu0 %v237_v1  ;;  %200 = vmatprep.mubr.msk.bf16.mxu1 %vm238_vm0, %v237_v1 }
   0x4   :  { %10 = vsyncpa [#allocation3], 0  ;;  %v22_v3 = vld [vmem:[%s305_s0] sm:$0x1]  ;;  %vm46_vm1 = vcmask 261120   ;;  %v210_v5 = vld [vmem:[%s308_s3 + $0x8] sm:$0xff]  }
   0x5   :  { %v209_v4 = vld [vmem:[%s308_s3] sm:$0xff]   ;;  %s239_s3 = smov [#allocation2]   ;;  %vm158_vm2 = vcmask 9216  }
   0x6   :  { %191 = vmatpush3.bf16.msra.mxu0 %v208_v2  ;;  %197 = vmatpush3.bf16.msra.mxu1 %v209_v4  ;;  %v174_v6 = vld [vmem:[%s307_s2] ss:$0 sm:$0xff]  ;;  %s166_s30 = sshll.u32 %s239_s3, 4  ;;  %s167_s30 = int_to_ptr.vmem [resolvable:$true] %s166_s30 }
   0x7   :  { %198 = vmatprep.subr.bf16.mxu1 %v237_v1  ;;  %v178_v14 = vld [vmem:[%s309_s4] ss:$0 sm:$0xff]  ;;  %s213_s2 = scalar_lea.vmem %s167_s30, 32  ;;  %p218_p1 = scmp.lt.s32.totalorder %s167_s30, %s167_s30 }
   0x8   :  { %p214_p0 = scmp.ne.s32.totalorder %s167_s30, %s213_s2  ;;  %p219_p2 = scmp.lt.s32.totalorder %s213_s2, %s213_s2 }
   0x9   :  { %193 = vmatmul.mubr.msk.bf16.vlgmr.msra.gmra.mrb[0].mxu0 %vm46_vm1, %v22_v3 }
   0xa   :  { %199 = vmatpush3.bf16.msra.mxu1 %v210_v5  ;;  %p220_p3 = por %p219_p2, %p218_p1 }
   0xc   :  { %p221_p4 = pnand %p220_p3, %p214_p0 }
  0xdc   :  { %v84_v7 = vpop.f32.mrb[0].mxu0 }
  0xdd   :  { %v85_v8 = vadd.f32 %v174_v6, %v84_v7  ;;  %v194_v9 = vpop.f32.mrb[1].mxu0 }
  0xde   :  { %v87_v10 = vpop.f32.mrb[2].mxu0 }
  0xdf   :  { %211 = vtanh.f32 %v85_v8  ;;  %v195_v11 = vpop.f32.mrb[3].mxu0 }
  0xe9   :  { %v212_v12 = vpop.eup %211 }
  0xea   :  { %v91_v13 = vpack.c.bf16 %v212_v12, %v212_v12 }
  0xec   :  { %201 = vmatmul.mubr.msk.bf16.vlgmr.msra.gmra.mrb[0].mxu1 %vm46_vm1, %v91_v13 }
 0x1bf   :  { %v152_v15 = vpop.f32.mrb[0].mxu1 }
 0x1c0   :  { %v153_v16 = vadd.f32 %v178_v14, %v152_v15  ;;  %v202_v17 = vpop.f32.mrb[1].mxu1 }
 0x1c1   :  { %v155_v18 = vpop.f32.mrb[2].mxu1 }
 0x1c2   :  { %v203_v19 = vpop.f32.mrb[3].mxu1  ;;  %159 = vst.msk [vmem:[#allocation2] sm:$0x3] %vm158_vm2, %v153_v16 }
 0x1c3   :  { %224 = shalt.err (!%p221_p4)
}
 0x1c4   :  { %s225_s4 = scalar_lea.hbm %s310_s5, 32 }
 0x1c5   :  { %p226_p5 = scmp.ne.s32.totalorder %s310_s5, %s225_s4  ;;  %p229_p6 = scmp.lt.u32.totalorder %s225_s4, %s310_s5 }
 0x1c7   :  { %p231_p7 = pnand %p229_p6, %p226_p5 }
 0x1c9   :  { %234 = shalt.err (!%p231_p7)
}
 0x1ca   :  { %169 = dma.vmem_to_hbm [thread:$0]  %s167_s30, 32, %s310_s5, [#allocation3]  }
 0x1cb   :  { %235 = dma.done.wait [#allocation3], 32  }
 0x1cc   :  { %236 = vsyncadd [#allocation3], 4294967264 }
 0x1cd   :  { %173 = vsyncpa [#allocation3], 1 }

</bundles_post_ra>
